<compile_context>
chip_gen: v7x
topology: tpu7x:2x2x1
jax: 0.10.0
libtpu: 0.0.40
codegen_flags: <defaults>
</compile_context>

<pallas_src>
import jax
import jax.numpy as jnp
from jax.experimental import pallas as pl
from jax.experimental.pallas import tpu as pltpu

# Logical layer dims (in, out) in forward order; fce5m/fce5v fused into (64, 64).
_LAYER_DIMS = [
    (600, 512), (512, 256), (256, 128), (128, 64), (64, 64),   # encoder (+fused head)
    (32, 64), (64, 128), (128, 256), (256, 512), (512, 600),   # decoder
]

_D_IN = 600
_D_PAD = 640        # 5 * 128 lane-dense padding for the 600-wide dims
_REP = 32


def _relu(x):
    return jnp.maximum(x, 0.0)


def _elu(x):
    # ELU with alpha=1.0 (PyTorch default): x if x > 0 else exp(x) - 1
    return jnp.where(x > 0, x, jnp.exp(x) - 1.0)


def vae_kernel(
    x_ref,
    we1_ref, we2_ref, we3_ref, we4_ref, we5_ref,
    wd1_ref, wd2_ref, wd3_ref, wd4_ref, wd5_ref,
    eps_ref,
    xout_ref, mulv_ref,
):
    f32 = jnp.float32
    bf16 = jnp.bfloat16

    def mm(a_f32, w_ref):
        # bf16 x bf16 MXU matmul with f32 accumulation.
        return jnp.dot(a_f32.astype(bf16), w_ref[...], preferred_element_type=f32)

    x = x_ref[...]

    # ---- encoder ----
    h = _relu(mm(x, we1_ref))
    h = _relu(mm(h, we2_ref))
    h = _relu(mm(h, we3_ref))
    h = _relu(mm(h, we4_ref))

    mulv = mm(h, we5_ref)              # (TB, 64): [:, :32] = mu, [:, 32:] = logvar
    mu = mulv[:, :_REP]
    logvar = mulv[:, _REP:]

    # ---- reparameterize: z = mu + eps * exp(0.5*logvar), eps ~ U[0,1) ----
    std = jnp.exp(0.5 * logvar)
    z = mu + eps_ref[...] * std

    # ---- decoder ----
    d = _elu(mm(z, wd1_ref))
    d = _elu(mm(d, wd2_ref))
    d = _elu(mm(d, wd3_ref))
    d = _elu(mm(d, wd4_ref))
    out = mm(d, wd5_ref)               # (TB, 640); cols 600: are zero-weight padding

    xout_ref[...] = out.astype(xout_ref.dtype)
    mulv_ref[...] = mulv.astype(mulv_ref.dtype)


def _round_up(n, m):
    return ((n + m - 1) // m) * m


def prepare_params(params):
    """Cast weights to bf16, fuse fce5m/fce5v, and pad the 600-wide dims to 640.

    `params` holds W.T (shape (in, out)) for each nn.Linear(in, out, bias=False).
    Returns the 10 kernel weight arrays in forward order.
    """
    bf16 = jnp.bfloat16

    we1 = jnp.zeros((_D_PAD, 512), bf16).at[:_D_IN, :].set(params["fce1"].astype(bf16))
    we5 = jnp.concatenate(
        [params["fce5m"], params["fce5v"]], axis=1
    ).astype(bf16)                                             # (64, 64)
    wd5 = jnp.zeros((512, _D_PAD), bf16).at[:, :_D_IN].set(params["fcd5"].astype(bf16))

    return [
        we1,
        params["fce2"].astype(bf16),
        params["fce3"].astype(bf16),
        params["fce4"].astype(bf16),
        we5,
        params["fcd1"].astype(bf16),
        params["fcd2"].astype(bf16),
        params["fcd3"].astype(bf16),
        params["fcd4"].astype(bf16),
        wd5,
    ]


def vae_forward(x, params, eps):
    """x: (B, 600) f32, params: dict of transposed f32 weights, eps: (B, 32) f32.

    Returns (reconstruction (B, 600), mu (B, 32), logvar (B, 32)), all f32.
    """
    B = x.shape[0]
    weights = prepare_params(params)

    # ---- batch tiling: pad B to a sublane multiple, tile at up to 256 rows ----
    b_pad = _round_up(B, 8)
    if b_pad > 256:
        tb = 256
        b_pad = _round_up(b_pad, tb)
    else:
        tb = b_pad
    n_tiles = b_pad // tb

    x_p = jnp.zeros((b_pad, _D_PAD), jnp.float32).at[:B, :_D_IN].set(x)
    eps_p = jnp.zeros((b_pad, _REP), jnp.float32).at[:B, :].set(eps)

    inputs = [x_p] + weights + [eps_p]

    # x / eps / outputs are blocked on the batch axis; weights are full blocks
    # with a constant index_map so they stay VMEM-resident across tiles.
    in_specs = (
        [pl.BlockSpec((tb, _D_PAD), lambda i: (i, 0))]
        + [pl.BlockSpec(w.shape, lambda i: (0, 0)) for w in weights]
        + [pl.BlockSpec((tb, _REP), lambda i: (i, 0))]
    )
    out_specs = (
        pl.BlockSpec((tb, _D_PAD), lambda i: (i, 0)),
        pl.BlockSpec((tb, 2 * _REP), lambda i: (i, 0)),
    )
    out_shapes = (
        jax.ShapeDtypeStruct((b_pad, _D_PAD), jnp.float32),     # padded reconstruction
        jax.ShapeDtypeStruct((b_pad, 2 * _REP), jnp.float32),   # mu || logvar
    )

    # Advisory cost estimate for XLA scheduling.
    flops = 2 * b_pad * sum(i * o for i, o in _LAYER_DIMS)
    transcendentals = b_pad * (32 + 64 + 128 + 256 + 512)       # std exp + ELU exps
    weight_bytes = sum(int(w.size) * 2 for w in weights)        # bf16
    act_bytes = b_pad * (_D_PAD + _D_PAD + 2 * _REP + _REP) * 4
    cost = pl.CostEstimate(
        flops=flops,
        transcendentals=transcendentals,
        bytes_accessed=weight_bytes + act_bytes,
    )

    xout_p, mulv = pl.pallas_call(
        vae_kernel,
        out_shape=out_shapes,
        grid=(n_tiles,),
        in_specs=in_specs,
        out_specs=out_specs,
        compiler_params=pltpu.CompilerParams(
            dimension_semantics=("parallel",),
            vmem_limit_bytes=24 << 20,
        ),
        cost_estimate=cost,
    )(*inputs)

    recon = xout_p[:B, :_D_IN]
    mu = mulv[:B, :_REP]
    logvar = mulv[:B, _REP:]
    return recon, mu, logvar


def init_params(key):
    """Deterministic init; nn.Linear(in, out, bias=False) weight W has shape
    (out, in).  We store W.T with shape (in, out) so the kernel computes x @ W.T."""
    dims = {
        "fce1": (600, 512),
        "fce2": (512, 256),
        "fce3": (256, 128),
        "fce4": (128, 64),
        "fce5m": (64, 32),
        "fce5v": (64, 32),
        "fcd1": (32, 64),
        "fcd2": (64, 128),
        "fcd3": (128, 256),
        "fcd4": (256, 512),
        "fcd5": (512, 600),
    }
    params = {}
    for name, (fan_in, fan_out) in dims.items():
        key, sub = jax.random.split(key)
        bound = 1.0 / jnp.sqrt(fan_in)  # Kaiming-uniform-ish like PyTorch default
        params[name] = jax.random.uniform(
            sub, (fan_in, fan_out), jnp.float32, minval=-bound, maxval=bound
        )
    return params


def reference_forward(x, params, eps):
    """Pure-JAX reference that mirrors the kernel's bf16-weight / bf16-activation
    matmuls with f32 accumulation (so tolerances can stay tight)."""
    bf16 = jnp.bfloat16
    f32 = jnp.float32

    def mm(a, w):
        return jnp.dot(a.astype(bf16), w.astype(bf16), preferred_element_type=f32)

    h = jnp.maximum(mm(x, params["fce1"]), 0.0)
    h = jnp.maximum(mm(h, params["fce2"]), 0.0)
    h = jnp.maximum(mm(h, params["fce3"]), 0.0)
    h = jnp.maximum(mm(h, params["fce4"]), 0.0)
    mu = mm(h, params["fce5m"])
    logvar = mm(h, params["fce5v"])
    z = mu + eps * jnp.exp(0.5 * logvar)
    elu = lambda v: jnp.where(v > 0, v, jnp.exp(v) - 1.0)
    d = elu(mm(z, params["fcd1"]))
    d = elu(mm(d, params["fcd2"]))
    d = elu(mm(d, params["fcd3"]))
    d = elu(mm(d, params["fcd4"]))
    return mm(d, params["fcd5"]), mu, logvar


if __name__ == "__main__":
    key = jax.random.PRNGKey(0)
    k_param, k_x, k_eps = jax.random.split(key, 3)

    B = 8
    params = init_params(k_param)
    x = jax.random.normal(k_x, (B, 600), jnp.float32)
    # torch.rand_like -> uniform [0, 1); generated host-side, passed to the kernel.
    eps = jax.random.uniform(k_eps, (B, _REP), jnp.float32)

    recon, mu, logvar = vae_forward(x, params, eps)
    jax.block_until_ready((recon, mu, logvar))

    r_ref, mu_ref, lv_ref = reference_forward(x, params, eps)
    assert jnp.allclose(recon, r_ref, atol=2e-3, rtol=2e-3)
    assert jnp.allclose(mu, mu_ref, atol=2e-3, rtol=2e-3)
    assert jnp.allclose(logvar, lv_ref, atol=2e-3, rtol=2e-3)

    print("KERNEL_OK")
</pallas_src>

<mosaic_0001>
module attributes {stable_mosaic.version = 11 : i64} {
  func.func @vae_kernel(%arg0: i32, %arg1: memref<8x640xf32, #tpu.memory_space<vmem>>, %arg2: memref<640x512xbf16, #tpu.memory_space<vmem>>, %arg3: memref<512x256xbf16, #tpu.memory_space<vmem>>, %arg4: memref<256x128xbf16, #tpu.memory_space<vmem>>, %arg5: memref<128x64xbf16, #tpu.memory_space<vmem>>, %arg6: memref<64x64xbf16, #tpu.memory_space<vmem>>, %arg7: memref<32x64xbf16, #tpu.memory_space<vmem>>, %arg8: memref<64x128xbf16, #tpu.memory_space<vmem>>, %arg9: memref<128x256xbf16, #tpu.memory_space<vmem>>, %arg10: memref<256x512xbf16, #tpu.memory_space<vmem>>, %arg11: memref<512x640xbf16, #tpu.memory_space<vmem>>, %arg12: memref<8x32xf32, #tpu.memory_space<vmem>>, %arg13: memref<8x640xf32, #tpu.memory_space<vmem>>, %arg14: memref<8x64xf32, #tpu.memory_space<vmem>>) attributes {dimension_semantics = [#tpu.dimension_semantics<parallel>], iteration_bounds = array<i64: 1>, scalar_prefetch = 0 : i64, scratch_operands = 0 : i64, tpu.core_type = #tpu.core_type<tc>, window_params = [{transform_indices = @transform_0, window_bounds = array<i64: 8, 640>}, {pipeline_mode = #tpu.pipeline_mode<synchronous>, transform_indices = @transform_1, window_bounds = array<i64: 640, 512>}, {pipeline_mode = #tpu.pipeline_mode<synchronous>, transform_indices = @transform_2, window_bounds = array<i64: 512, 256>}, {pipeline_mode = #tpu.pipeline_mode<synchronous>, transform_indices = @transform_3, window_bounds = array<i64: 256, 128>}, {pipeline_mode = #tpu.pipeline_mode<synchronous>, transform_indices = @transform_4, window_bounds = array<i64: 128, 64>}, {pipeline_mode = #tpu.pipeline_mode<synchronous>, transform_indices = @transform_5, window_bounds = array<i64: 64, 64>}, {pipeline_mode = #tpu.pipeline_mode<synchronous>, transform_indices = @transform_6, window_bounds = array<i64: 32, 64>}, {pipeline_mode = #tpu.pipeline_mode<synchronous>, transform_indices = @transform_7, window_bounds = array<i64: 64, 128>}, {pipeline_mode = #tpu.pipeline_mode<synchronous>, transform_indices = @transform_8, window_bounds = array<i64: 128, 256>}, {pipeline_mode = #tpu.pipeline_mode<synchronous>, transform_indices = @transform_9, window_bounds = array<i64: 256, 512>}, {pipeline_mode = #tpu.pipeline_mode<synchronous>, transform_indices = @transform_10, window_bounds = array<i64: 512, 640>}, {transform_indices = @transform_11, window_bounds = array<i64: 8, 32>}, {transform_indices = @transform_12, window_bounds = array<i64: 8, 640>}, {transform_indices = @transform_13, window_bounds = array<i64: 8, 64>}]} {
    %c0 = arith.constant 0 : index
    %c0_0 = arith.constant 0 : index
    %0 = vector.load %arg1[%c0, %c0_0] : memref<8x640xf32, #tpu.memory_space<vmem>>, vector<8x640xf32>
    %1 = arith.truncf %0 : vector<8x640xf32> to vector<8x640xbf16>
    %c0_1 = arith.constant 0 : index
    %c0_2 = arith.constant 0 : index
    %2 = vector.load %arg2[%c0_1, %c0_2] : memref<640x512xbf16, #tpu.memory_space<vmem>>, vector<640x512xbf16>
    %cst = arith.constant dense<0.000000e+00> : vector<8x512xf32>
    %3 = tpu.matmul %1, %2, %cst {dimension_numbers = #tpu.dot_dimension_numbers<[1], [0], [0], [1], [0, 0, 1, 1], [], []>} : vector<8x640xbf16>, vector<640x512xbf16>, vector<8x512xf32> -> vector<8x512xf32>
    %cst_3 = arith.constant 0.000000e+00 : f32
    %4 = vector.broadcast %cst_3 : f32 to vector<8x512xf32>
    %5 = arith.maximumf %3, %4 : vector<8x512xf32>
    %6 = arith.truncf %5 : vector<8x512xf32> to vector<8x512xbf16>
    %c0_4 = arith.constant 0 : index
    %c0_5 = arith.constant 0 : index
    %7 = vector.load %arg3[%c0_4, %c0_5] : memref<512x256xbf16, #tpu.memory_space<vmem>>, vector<512x256xbf16>
    %cst_6 = arith.constant dense<0.000000e+00> : vector<8x256xf32>
    %8 = tpu.matmul %6, %7, %cst_6 {dimension_numbers = #tpu.dot_dimension_numbers<[1], [0], [0], [1], [0, 0, 1, 1], [], []>} : vector<8x512xbf16>, vector<512x256xbf16>, vector<8x256xf32> -> vector<8x256xf32>
    %cst_7 = arith.constant 0.000000e+00 : f32
    %9 = vector.broadcast %cst_7 : f32 to vector<8x256xf32>
    %10 = arith.maximumf %8, %9 : vector<8x256xf32>
    %11 = arith.truncf %10 : vector<8x256xf32> to vector<8x256xbf16>
    %c0_8 = arith.constant 0 : index
    %c0_9 = arith.constant 0 : index
    %12 = vector.load %arg4[%c0_8, %c0_9] : memref<256x128xbf16, #tpu.memory_space<vmem>>, vector<256x128xbf16>
    %cst_10 = arith.constant dense<0.000000e+00> : vector<8x128xf32>
    %13 = tpu.matmul %11, %12, %cst_10 {dimension_numbers = #tpu.dot_dimension_numbers<[1], [0], [0], [1], [0, 0, 1, 1], [], []>} : vector<8x256xbf16>, vector<256x128xbf16>, vector<8x128xf32> -> vector<8x128xf32>
    %cst_11 = arith.constant 0.000000e+00 : f32
    %14 = vector.broadcast %cst_11 : f32 to vector<8x128xf32>
    %15 = arith.maximumf %13, %14 : vector<8x128xf32>
    %16 = arith.truncf %15 : vector<8x128xf32> to vector<8x128xbf16>
    %c0_12 = arith.constant 0 : index
    %c0_13 = arith.constant 0 : index
    %17 = vector.load %arg5[%c0_12, %c0_13] : memref<128x64xbf16, #tpu.memory_space<vmem>>, vector<128x64xbf16>
    %cst_14 = arith.constant dense<0.000000e+00> : vector<8x64xf32>
    %18 = tpu.matmul %16, %17, %cst_14 {dimension_numbers = #tpu.dot_dimension_numbers<[1], [0], [0], [1], [0, 0, 1, 1], [], []>} : vector<8x128xbf16>, vector<128x64xbf16>, vector<8x64xf32> -> vector<8x64xf32>
    %cst_15 = arith.constant 0.000000e+00 : f32
    %19 = vector.broadcast %cst_15 : f32 to vector<8x64xf32>
    %20 = arith.maximumf %18, %19 : vector<8x64xf32>
    %21 = arith.truncf %20 : vector<8x64xf32> to vector<8x64xbf16>
    %c0_16 = arith.constant 0 : index
    %c0_17 = arith.constant 0 : index
    %22 = vector.load %arg6[%c0_16, %c0_17] : memref<64x64xbf16, #tpu.memory_space<vmem>>, vector<64x64xbf16>
    %cst_18 = arith.constant dense<0.000000e+00> : vector<8x64xf32>
    %23 = tpu.matmul %21, %22, %cst_18 {dimension_numbers = #tpu.dot_dimension_numbers<[1], [0], [0], [1], [0, 0, 1, 1], [], []>} : vector<8x64xbf16>, vector<64x64xbf16>, vector<8x64xf32> -> vector<8x64xf32>
    %24 = vector.extract_strided_slice %23 {offsets = [0, 0], sizes = [8, 32], strides = [1, 1]} : vector<8x64xf32> to vector<8x32xf32>
    %25 = vector.extract_strided_slice %23 {offsets = [0, 32], sizes = [8, 32], strides = [1, 1]} : vector<8x64xf32> to vector<8x32xf32>
    %cst_19 = arith.constant 5.000000e-01 : f32
    %26 = vector.broadcast %cst_19 : f32 to vector<8x32xf32>
    %27 = arith.mulf %26, %25 : vector<8x32xf32>
    %28 = math.exp %27 : vector<8x32xf32>
    %c0_20 = arith.constant 0 : index
    %c0_21 = arith.constant 0 : index
    %29 = vector.load %arg12[%c0_20, %c0_21] : memref<8x32xf32, #tpu.memory_space<vmem>>, vector<8x32xf32>
    %30 = arith.mulf %29, %28 : vector<8x32xf32>
    %31 = arith.addf %24, %30 : vector<8x32xf32>
    %32 = arith.truncf %31 : vector<8x32xf32> to vector<8x32xbf16>
    %c0_22 = arith.constant 0 : index
    %c0_23 = arith.constant 0 : index
    %33 = vector.load %arg7[%c0_22, %c0_23] : memref<32x64xbf16, #tpu.memory_space<vmem>>, vector<32x64xbf16>
    %cst_24 = arith.constant dense<0.000000e+00> : vector<8x64xf32>
    %34 = tpu.matmul %32, %33, %cst_24 {dimension_numbers = #tpu.dot_dimension_numbers<[1], [0], [0], [1], [0, 0, 1, 1], [], []>} : vector<8x32xbf16>, vector<32x64xbf16>, vector<8x64xf32> -> vector<8x64xf32>
    %cst_25 = arith.constant 0.000000e+00 : f32
    %35 = vector.broadcast %cst_25 : f32 to vector<8x64xf32>
    %36 = arith.cmpf ogt, %34, %35 : vector<8x64xf32>
    %37 = math.exp %34 : vector<8x64xf32>
    %cst_26 = arith.constant 1.000000e+00 : f32
    %38 = vector.broadcast %cst_26 : f32 to vector<8x64xf32>
    %39 = arith.subf %37, %38 : vector<8x64xf32>
    %40 = arith.select %36, %34, %39 : vector<8x64xi1>, vector<8x64xf32>
    %41 = arith.truncf %40 : vector<8x64xf32> to vector<8x64xbf16>
    %c0_27 = arith.constant 0 : index
    %c0_28 = arith.constant 0 : index
    %42 = vector.load %arg8[%c0_27, %c0_28] : memref<64x128xbf16, #tpu.memory_space<vmem>>, vector<64x128xbf16>
    %cst_29 = arith.constant dense<0.000000e+00> : vector<8x128xf32>
    %43 = tpu.matmul %41, %42, %cst_29 {dimension_numbers = #tpu.dot_dimension_numbers<[1], [0], [0], [1], [0, 0, 1, 1], [], []>} : vector<8x64xbf16>, vector<64x128xbf16>, vector<8x128xf32> -> vector<8x128xf32>
    %cst_30 = arith.constant 0.000000e+00 : f32
    %44 = vector.broadcast %cst_30 : f32 to vector<8x128xf32>
    %45 = arith.cmpf ogt, %43, %44 : vector<8x128xf32>
    %46 = math.exp %43 : vector<8x128xf32>
    %cst_31 = arith.constant 1.000000e+00 : f32
    %47 = vector.broadcast %cst_31 : f32 to vector<8x128xf32>
    %48 = arith.subf %46, %47 : vector<8x128xf32>
    %49 = arith.select %45, %43, %48 : vector<8x128xi1>, vector<8x128xf32>
    %50 = arith.truncf %49 : vector<8x128xf32> to vector<8x128xbf16>
    %c0_32 = arith.constant 0 : index
    %c0_33 = arith.constant 0 : index
    %51 = vector.load %arg9[%c0_32, %c0_33] : memref<128x256xbf16, #tpu.memory_space<vmem>>, vector<128x256xbf16>
    %cst_34 = arith.constant dense<0.000000e+00> : vector<8x256xf32>
    %52 = tpu.matmul %50, %51, %cst_34 {dimension_numbers = #tpu.dot_dimension_numbers<[1], [0], [0], [1], [0, 0, 1, 1], [], []>} : vector<8x128xbf16>, vector<128x256xbf16>, vector<8x256xf32> -> vector<8x256xf32>
    %cst_35 = arith.constant 0.000000e+00 : f32
    %53 = vector.broadcast %cst_35 : f32 to vector<8x256xf32>
    %54 = arith.cmpf ogt, %52, %53 : vector<8x256xf32>
    %55 = math.exp %52 : vector<8x256xf32>
    %cst_36 = arith.constant 1.000000e+00 : f32
    %56 = vector.broadcast %cst_36 : f32 to vector<8x256xf32>
    %57 = arith.subf %55, %56 : vector<8x256xf32>
    %58 = arith.select %54, %52, %57 : vector<8x256xi1>, vector<8x256xf32>
    %59 = arith.truncf %58 : vector<8x256xf32> to vector<8x256xbf16>
    %c0_37 = arith.constant 0 : index
    %c0_38 = arith.constant 0 : index
    %60 = vector.load %arg10[%c0_37, %c0_38] : memref<256x512xbf16, #tpu.memory_space<vmem>>, vector<256x512xbf16>
    %cst_39 = arith.constant dense<0.000000e+00> : vector<8x512xf32>
    %61 = tpu.matmul %59, %60, %cst_39 {dimension_numbers = #tpu.dot_dimension_numbers<[1], [0], [0], [1], [0, 0, 1, 1], [], []>} : vector<8x256xbf16>, vector<256x512xbf16>, vector<8x512xf32> -> vector<8x512xf32>
    %cst_40 = arith.constant 0.000000e+00 : f32
    %62 = vector.broadcast %cst_40 : f32 to vector<8x512xf32>
    %63 = arith.cmpf ogt, %61, %62 : vector<8x512xf32>
    %64 = math.exp %61 : vector<8x512xf32>
    %cst_41 = arith.constant 1.000000e+00 : f32
    %65 = vector.broadcast %cst_41 : f32 to vector<8x512xf32>
    %66 = arith.subf %64, %65 : vector<8x512xf32>
    %67 = arith.select %63, %61, %66 : vector<8x512xi1>, vector<8x512xf32>
    %68 = arith.truncf %67 : vector<8x512xf32> to vector<8x512xbf16>
    %c0_42 = arith.constant 0 : index
    %c0_43 = arith.constant 0 : index
    %69 = vector.load %arg11[%c0_42, %c0_43] : memref<512x640xbf16, #tpu.memory_space<vmem>>, vector<512x640xbf16>
    %cst_44 = arith.constant dense<0.000000e+00> : vector<8x640xf32>
    %70 = tpu.matmul %68, %69, %cst_44 {dimension_numbers = #tpu.dot_dimension_numbers<[1], [0], [0], [1], [0, 0, 1, 1], [], []>} : vector<8x512xbf16>, vector<512x640xbf16>, vector<8x640xf32> -> vector<8x640xf32>
    %c0_45 = arith.constant 0 : index
    %c0_46 = arith.constant 0 : index
    %71 = vector.load %arg13[%c0_45, %c0_46] : memref<8x640xf32, #tpu.memory_space<vmem>>, vector<8x640xf32>
    tpu.vector_store %arg13[%c0_45, %c0_46], %70 {strides = array<i32>} : memref<8x640xf32, #tpu.memory_space<vmem>>, vector<8x640xf32>,
    %c0_47 = arith.constant 0 : index
    %c0_48 = arith.constant 0 : index
    %72 = vector.load %arg14[%c0_47, %c0_48] : memref<8x64xf32, #tpu.memory_space<vmem>>, vector<8x64xf32>
    tpu.vector_store %arg14[%c0_47, %c0_48], %23 {strides = array<i32>} : memref<8x64xf32, #tpu.memory_space<vmem>>, vector<8x64xf32>,
    return
  }
  func.func @transform_0(%arg0: i32) -> (i32, i32) {
    %c0_i32 = arith.constant 0 : i32
    %c0_i32_0 = arith.constant 0 : i32
    return %arg0, %c0_i32 : i32, i32
  }
  func.func @transform_1(%arg0: i32) -> (i32, i32) {
    %c0_i32 = arith.constant 0 : i32
    %c0_i32_0 = arith.constant 0 : i32
    %c0_i32_1 = arith.constant 0 : i32
    return %c0_i32, %c0_i32_0 : i32, i32
  }
  func.func @transform_2(%arg0: i32) -> (i32, i32) {
    %c0_i32 = arith.constant 0 : i32
    %c0_i32_0 = arith.constant 0 : i32
    %c0_i32_1 = arith.constant 0 : i32
    return %c0_i32, %c0_i32_0 : i32, i32
  }
  func.func @transform_3(%arg0: i32) -> (i32, i32) {
    %c0_i32 = arith.constant 0 : i32
    %c0_i32_0 = arith.constant 0 : i32
    %c0_i32_1 = arith.constant 0 : i32
    return %c0_i32, %c0_i32_0 : i32, i32
  }
  func.func @transform_4(%arg0: i32) -> (i32, i32) {
    %c0_i32 = arith.constant 0 : i32
    %c0_i32_0 = arith.constant 0 : i32
    %c0_i32_1 = arith.constant 0 : i32
    return %c0_i32, %c0_i32_0 : i32, i32
  }
  func.func @transform_5(%arg0: i32) -> (i32, i32) {
    %c0_i32 = arith.constant 0 : i32
    %c0_i32_0 = arith.constant 0 : i32
    %c0_i32_1 = arith.constant 0 : i32
    return %c0_i32, %c0_i32_0 : i32, i32
  }
  func.func @transform_6(%arg0: i32) -> (i32, i32) {
    %c0_i32 = arith.constant 0 : i32
    %c0_i32_0 = arith.constant 0 : i32
    %c0_i32_1 = arith.constant 0 : i32
    return %c0_i32, %c0_i32_0 : i32, i32
  }
  func.func @transform_7(%arg0: i32) -> (i32, i32) {
    %c0_i32 = arith.constant 0 : i32
    %c0_i32_0 = arith.constant 0 : i32
    %c0_i32_1 = arith.constant 0 : i32
    return %c0_i32, %c0_i32_0 : i32, i32
  }
  func.func @transform_8(%arg0: i32) -> (i32, i32) {
    %c0_i32 = arith.constant 0 : i32
    %c0_i32_0 = arith.constant 0 : i32
    %c0_i32_1 = arith.constant 0 : i32
    return %c0_i32, %c0_i32_0 : i32, i32
  }
  func.func @transform_9(%arg0: i32) -> (i32, i32) {
    %c0_i32 = arith.constant 0 : i32
    %c0_i32_0 = arith.constant 0 : i32
    %c0_i32_1 = arith.constant 0 : i32
    return %c0_i32, %c0_i32_0 : i32, i32
  }
  func.func @transform_10(%arg0: i32) -> (i32, i32) {
    %c0_i32 = arith.constant 0 : i32
    %c0_i32_0 = arith.constant 0 : i32
    %c0_i32_1 = arith.constant 0 : i32
    return %c0_i32, %c0_i32_0 : i32, i32
  }
  func.func @transform_11(%arg0: i32) -> (i32, i32) {
    %c0_i32 = arith.constant 0 : i32
    %c0_i32_0 = arith.constant 0 : i32
    return %arg0, %c0_i32 : i32, i32
  }
  func.func @transform_12(%arg0: i32) -> (i32, i32) {
    %c0_i32 = arith.constant 0 : i32
    %c0_i32_0 = arith.constant 0 : i32
    return %arg0, %c0_i32 : i32, i32
  }
  func.func @transform_13(%arg0: i32) -> (i32, i32) {
    %c0_i32 = arith.constant 0 : i32
    %c0_i32_0 = arith.constant 0 : i32
    return %arg0, %c0_i32 : i32, i32
  }
}

</mosaic_0001>

<bundles_post_ra>
// kernel: tpu_custom_call.1
= control target key start
LH: loop header
LB: loop body
LE: loop exit
PB: predicated region body
PF: predicated region fallthrough
CT: control target
= control target key end

     0   :  { %19 = vsyncpa [#allocation3], 0  ;;  %s6281_s0 = inlined_call_operand.vmem [shape: f32[8,640], index: 0, kind: input, shape index: {}]   ;;  %s6282_s1 = inlined_call_operand.hbm [shape: bf16[640,512], index: 1, kind: input, shape index: {}]   ;;  %s6283_s2 = inlined_call_operand.hbm [shape: bf16[512,256], index: 2, kind: input, shape index: {}]   ;;  %s6284_s3 = inlined_call_operand.hbm [shape: bf16[256,128], index: 3, kind: input, shape index: {}]   ;;  %s6285_s4 = inlined_call_operand.vmem [shape: bf16[128,64], index: 4, kind: input, shape index: {}]   ;;  %s6286_s5 = inlined_call_operand.vmem [shape: bf16[64,64], index: 5, kind: input, shape index: {}]   ;;  %s6287_s6 = inlined_call_operand.hbm [shape: bf16[32,64], index: 6, kind: input, shape index: {}]   ;;  %s6288_s7 = inlined_call_operand.vmem [shape: bf16[64,128], index: 7, kind: input, shape index: {}]   ;;  %s6289_s8 = inlined_call_operand.hbm [shape: bf16[128,256], index: 8, kind: input, shape index: {}]   ;;  %s6290_s9 = inlined_call_operand.hbm [shape: bf16[256,512], index: 9, kind: input, shape index: {}]   ;;  %s6291_s10 = inlined_call_operand.hbm [shape: bf16[512,640], index: 10, kind: input, shape index: {}]   ;;  %s6292_s11 = inlined_call_operand.vmem [shape: f32[8,32], index: 11, kind: input, shape index: {}]   ;;  %s6293_s12 = inlined_call_operand.hbm [shape: f32[8,640], index: 12, kind: output, shape index: {0}]   ;;  %s6294_s13 = inlined_call_operand.hbm [shape: f32[8,64], index: 13, kind: output, shape index: {1}]  }
   0x1   :  { %20 = vsyncpa [#allocation6], 0 }
   0x2   :  { %21 = vsyncpa [#allocation9], 0 }
   0x3   :  { %22 = vsyncpa [#allocation12], 0 }
   0x4   :  { %23 = vsyncpa [#allocation4], 0 }
   0x5   :  { %24 = vsyncpa [#allocation16], 0  ;;  %s5930_s25 = smov [#allocation5]   ;;  %s5720_s29 = scalar_lea.hbm %s6283_s2, 8192 }
   0x6   :  { %s44_s26 = sshll.u32 %s5930_s25, 4  ;;  %p5721_p0 = scmp.ne.s32.totalorder %s6283_s2, %s5720_s29  ;;  %s45_s26 = int_to_ptr.vmem [resolvable:$true] %s44_s26 }
   0x7   :  { %p5724_p1 = scmp.lt.u32.totalorder %s5720_s29, %s6283_s2 }
   0x9   :  { %p5726_p2 = pnand %p5724_p1, %p5721_p0 }
   0xb   :  { %5729 = shalt.err (!%p5726_p2)
}
   0xc   :  { %s5730_s17 = scalar_lea.vmem %s45_s26, 8192  ;;  %p5735_p4 = scmp.lt.s32.totalorder %s45_s26, %s45_s26 }
   0xd   :  { %p5731_p3 = scmp.ne.s32.totalorder %s45_s26, %s5730_s17  ;;  %p5736_p5 = scmp.lt.s32.totalorder %s5730_s17, %s5730_s17 }
   0xf   :  { %p5737_p6 = por %p5736_p5, %p5735_p4 }
  0x11   :  { %p5738_p7 = pnand %p5737_p6, %p5731_p3 }
  0x13   :  { %5741 = shalt.err (!%p5738_p7)
}
  0x14   :  { %s5931_s18 = smov 128   ;;  %s5932_s19 = smov 8  }
  0x15   :  { %50 = dma.hbm_to_vmem [thread:$0]  %s6283_s2, 8192, %s45_s26, [#allocation6], %s5931_s18, %s5931_s18, %s5932_s19  }
  0x16   :  { %s5933_s22 = smov [#allocation8]   ;;  %s5742_s27 = scalar_lea.hbm %s6287_s6, 256 }
  0x17   :  { %s72_s23 = sshll.u32 %s5933_s22, 4  ;;  %p5743_p8 = scmp.ne.s32.totalorder %s6287_s6, %s5742_s27  ;;  %s73_s23 = int_to_ptr.vmem [resolvable:$true] %s72_s23 }
  0x18   :  { %p5746_p9 = scmp.lt.u32.totalorder %s5742_s27, %s6287_s6 }
  0x1a   :  { %p5748_p10 = pnand %p5746_p9, %p5743_p8 }
  0x1c   :  { %5751 = shalt.err (!%p5748_p10)
}
  0x1d   :  { %s5752_s15 = scalar_lea.vmem %s73_s23, 256  ;;  %p5757_p12 = scmp.lt.s32.totalorder %s73_s23, %s73_s23 }
  0x1e   :  { %p5753_p11 = scmp.ne.s32.totalorder %s73_s23, %s5752_s15  ;;  %p5758_p13 = scmp.lt.s32.totalorder %s5752_s15, %s5752_s15 }
  0x20   :  { %p5759_p0 = por %p5758_p13, %p5757_p12 }
  0x22   :  { %p5760_p1 = pnand %p5759_p0, %p5753_p11 }
  0x24   :  { %5763 = shalt.err (!%p5760_p1)
}
  0x25   :  { %s5934_s2 = smov 64   ;;  %s5935_s26 = smov 4  }
  0x26   :  { %78 = dma.hbm_to_vmem [thread:$0]  %s6287_s6, 256, %s73_s23, [#allocation9], %s5934_s2, %s5934_s2, %s5935_s26  }
  0x27   :  { %s5936_s20 = smov [#allocation11]   ;;  %s5937_s22 = smov [#allocation2]  }
  0x28   :  { %s98_s21 = sshll.u32 %s5936_s20, 4  ;;  %s32_s24 = sshll.u32 %s5937_s22, 4  ;;  %s99_s21 = int_to_ptr.vmem [resolvable:$true] %s98_s21  ;;  %s6051_s24 = int_to_ptr.vmem [resolvable:$true] %s32_s24 }
  0x29   :  { %s5764_s28 = scalar_lea.hbm %s6290_s9, 8192 }
  0x2a   :  { %p5765_p2 = scmp.ne.s32.totalorder %s6290_s9, %s5764_s28  ;;  %p5768_p3 = scmp.lt.u32.totalorder %s5764_s28, %s6290_s9 }
  0x2c   :  { %p5770_p4 = pnand %p5768_p3, %p5765_p2 }
  0x2e   :  { %5773 = shalt.err (!%p5770_p4)
}
  0x2f   :  { %s5774_s6 = scalar_lea.vmem %s99_s21, 8192  ;;  %p5779_p6 = scmp.lt.s32.totalorder %s99_s21, %s99_s21 }
  0x30   :  { %p5775_p5 = scmp.ne.s32.totalorder %s99_s21, %s5774_s6  ;;  %p5780_p7 = scmp.lt.s32.totalorder %s5774_s6, %s5774_s6 }
  0x32   :  { %p5781_p8 = por %p5780_p7, %p5779_p6 }
  0x34   :  { %p5782_p9 = pnand %p5781_p8, %p5775_p5 }
  0x36   :  { %5785 = shalt.err (!%p5782_p9)
}
  0x37   :  { %s5938_s23 = smov 256   ;;  %s5939_s16 = smov 16  }
  0x38   :  { %104 = dma.hbm_to_vmem [thread:$0]  %s6290_s9, 8192, %s99_s21, [#allocation12], %s5938_s23, %s5938_s23, %s5939_s16  }
  0x39   :  { %s5786_s27 = scalar_lea.hbm %s6282_s1, 20480 }
  0x3a   :  { %p5787_p10 = scmp.ne.s32.totalorder %s6282_s1, %s5786_s27  ;;  %p5790_p11 = scmp.lt.u32.totalorder %s5786_s27, %s6282_s1 }
  0x3c   :  { %p5792_p12 = pnand %p5790_p11, %p5787_p10 }
  0x3e   :  { %5795 = shalt.err (!%p5792_p12)
}
  0x3f   :  { %s5796_s15 = scalar_lea.vmem %s6051_s24, 20480  ;;  %p5801_p0 = scmp.lt.s32.totalorder %s6051_s24, %s6051_s24 }
  0x40   :  { %p5797_p13 = scmp.ne.s32.totalorder %s6051_s24, %s5796_s15  ;;  %p5802_p1 = scmp.lt.s32.totalorder %s5796_s15, %s5796_s15 }
  0x42   :  { %p5803_p2 = por %p5802_p1, %p5801_p0 }
  0x44   :  { %p5804_p3 = pnand %p5803_p2, %p5797_p13 }
  0x46   :  { %5807 = shalt.err (!%p5804_p3)
}
  0x47   :  { %38 = dma.hbm_to_vmem [thread:$0]  %s6282_s1, 20480, %s6051_s24, [#allocation3], %s5938_s23, %s5938_s23, %s5939_s16  }
  0x48   :  { %s5940_s6 = smov [#allocation7]   ;;  %s5941_s20 = smov [#allocation10]  }
  0x49   :  { %s56_s17 = sshll.u32 %s5940_s6, 4  ;;  %s86_s22 = sshll.u32 %s5941_s20, 4  ;;  %s57_s17 = int_to_ptr.vmem [resolvable:$true] %s56_s17  ;;  %s6082_s22 = int_to_ptr.vmem [resolvable:$true] %s86_s22 }
  0x4a   :  { %s5808_s28 = scalar_lea.hbm %s6284_s3, 2048 }
  0x4b   :  { %p5809_p4 = scmp.ne.s32.totalorder %s6284_s3, %s5808_s28  ;;  %p5812_p5 = scmp.lt.u32.totalorder %s5808_s28, %s6284_s3 }
  0x4d   :  { %p5814_p6 = pnand %p5812_p5, %p5809_p4 }
  0x4f   :  { %5817 = shalt.err (!%p5814_p6)
}
  0x50   :  { %s5818_s1 = scalar_lea.vmem %s57_s17, 2048  ;;  %p5823_p8 = scmp.lt.s32.totalorder %s57_s17, %s57_s17 }
  0x51   :  { %p5819_p7 = scmp.ne.s32.totalorder %s57_s17, %s5818_s1  ;;  %p5824_p9 = scmp.lt.s32.totalorder %s5818_s1, %s5818_s1 }
  0x53   :  { %p5825_p10 = por %p5824_p9, %p5823_p8 }
  0x55   :  { %p5826_p11 = pnand %p5825_p10, %p5819_p7 }
  0x57   :  { %5829 = shalt.err (!%p5826_p11)
}
  0x58   :  { %62 = dma.hbm_to_vmem [thread:$0]  %s6284_s3, 2048, %s57_s17, [#allocation6], %s5934_s2, %s5934_s2, %s5935_s26  }
  0x59   :  { %s5830_s21 = scalar_lea.hbm %s6289_s8, 2048 }
  0x5a   :  { %p5831_p12 = scmp.ne.s32.totalorder %s6289_s8, %s5830_s21  ;;  %p5834_p13 = scmp.lt.u32.totalorder %s5830_s21, %s6289_s8 }
  0x5c   :  { %p5836_p0 = pnand %p5834_p13, %p5831_p12 }
  0x5e   :  { %5839 = shalt.err (!%p5836_p0)
}
  0x5f   :  { %s5840_s28 = scalar_lea.vmem %s6082_s22, 2048  ;;  %p5845_p2 = scmp.lt.s32.totalorder %s6082_s22, %s6082_s22 }
  0x60   :  { %p5841_p1 = scmp.ne.s32.totalorder %s6082_s22, %s5840_s28  ;;  %p5846_p3 = scmp.lt.s32.totalorder %s5840_s28, %s5840_s28 }
  0x62   :  { %p5847_p4 = por %p5846_p3, %p5845_p2 }
  0x64   :  { %p5848_p5 = pnand %p5847_p4, %p5841_p1 }
  0x66   :  { %5851 = shalt.err (!%p5848_p5)
}
  0x67   :  { %92 = dma.hbm_to_vmem [thread:$0]  %s6289_s8, 2048, %s6082_s22, [#allocation9], %s5931_s18, %s5931_s18, %s5932_s19  }
  0x68   :  { %s5942_s26 = smov [#allocation13]   ;;  %s5852_s14 = scalar_lea.hbm %s6291_s10, 20480 }
  0x69   :  { %s110_s17 = sshll.u32 %s5942_s26, 4  ;;  %p5853_p6 = scmp.ne.s32.totalorder %s6291_s10, %s5852_s14  ;;  %s111_s17 = int_to_ptr.vmem [resolvable:$true] %s110_s17 }
  0x6a   :  { %p5856_p7 = scmp.lt.u32.totalorder %s5852_s14, %s6291_s10 }
  0x6c   :  { %p5858_p8 = pnand %p5856_p7, %p5853_p6 }
  0x6e   :  { %5861 = shalt.err (!%p5858_p8)
}
  0x6f   :  { %s5862_s16 = scalar_lea.vmem %s111_s17, 20480  ;;  %p5867_p10 = scmp.lt.s32.totalorder %s111_s17, %s111_s17 }
  0x70   :  { %p5863_p9 = scmp.ne.s32.totalorder %s111_s17, %s5862_s16  ;;  %p5868_p11 = scmp.lt.s32.totalorder %s5862_s16, %s5862_s16 }
  0x72   :  { %p5869_p12 = por %p5868_p11, %p5867_p10 }
  0x74   :  { %p5870_p13 = pnand %p5869_p12, %p5863_p9 }
  0x76   :  { %5873 = shalt.err (!%p5870_p13)
}
  0x77   :  { %s5943_s8 = smov 320   ;;  %s5944_s18 = smov 20  }
  0x78   :  { %116 = dma.hbm_to_vmem [thread:$0]  %s6291_s10, 20480, %s111_s17, [#allocation12], %s5943_s8, %s5943_s8, %s5944_s18  }
  0x79   :  { %5918 = dma.done.wait [#allocation3], 20480  }
  0x7a   :  { %5919 = vsyncadd [#allocation3], 4294946816 }
  0x7b   :  { %5920 = dma.done.wait [#allocation6], 10240  }
  0x7c   :  { %5921 = vsyncadd [#allocation6], 4294957056 }
  0x7d   :  { %5922 = dma.done.wait [#allocation9], 2304  }
  0x7e   :  { %5923 = vsyncadd [#allocation9], 4294964992 }
  0x7f   :  { %5924 = dma.done.wait [#allocation12], 28672  }
  0x80   :  { %5925 = vsyncadd [#allocation12], 4294938624  ;;  %v4988_v0 = vld [vmem:[#allocation2 + $0x4] ss:$16 sps:$4 sm:$0xff]   ;;  %v4990_v1 = vld [vmem:[#allocation2 + $0xc] ss:$16 sps:$4 sm:$0xff]  }
  0x81   :  { %1111 = vmatprep.subr.bf16.mxu0 %v4988_v0  ;;  %v4992_v2 = vld [vmem:[#allocation2] ss:$16 sps:$4 sm:$0xff]   ;;  %v4993_v3 = vld [vmem:[#allocation2 + $0x8] ss:$16 sps:$4 sm:$0xff]   ;;  %1234 = vmatprep.subr.bf16.mxu1 %v4990_v1  ;;  %v4994_v4 = vld [vmem:[#allocation2 + $0x24] ss:$16 sps:$4 sm:$0xff]  }
  0x82   :  { %1112 = vmatpush1.bf16.msra.mxu0 %v4992_v2  ;;  %1235 = vmatpush1.bf16.msra.mxu1 %v4993_v3  ;;  %v4996_v5 = vld [vmem:[#allocation2 + $0x2c] ss:$16 sps:$4 sm:$0xff]   ;;  %v4998_v6 = vld [vmem:[#allocation2 + $0x20] ss:$16 sps:$4 sm:$0xff]   ;;  %v4999_v7 = vld [vmem:[#allocation2 + $0x28] ss:$16 sps:$4 sm:$0xff]  }
  0x83   :  { %1113 = vmatprep.subr.bf16.mxu0 %v4994_v4  ;;  %1236 = vmatprep.subr.bf16.mxu1 %v4996_v5  ;;  %v5000_v8 = vld [vmem:[#allocation2 + $0x44] ss:$16 sps:$4 sm:$0xff]   ;;  %v5002_v9 = vld [vmem:[#allocation2 + $0x4c] ss:$16 sps:$4 sm:$0xff]   ;;  %v5004_v10 = vld [vmem:[#allocation2 + $0x40] ss:$16 sps:$4 sm:$0xff]  }
  0x84   :  { %v5005_v11 = vld [vmem:[#allocation2 + $0x48] ss:$16 sps:$4 sm:$0xff]   ;;  %v5006_v12 = vld [vmem:[#allocation2 + $0x64] ss:$16 sps:$4 sm:$0xff]   ;;  %v5008_v13 = vld [vmem:[#allocation2 + $0x6c] ss:$16 sps:$4 sm:$0xff]  }
  0x85   :  { %v5010_v14 = vld [vmem:[#allocation2 + $0x60] ss:$16 sps:$4 sm:$0xff]   ;;  %v5011_v15 = vld [vmem:[#allocation2 + $0x68] ss:$16 sps:$4 sm:$0xff]   ;;  %v5012_v16 = vld [vmem:[#allocation2 + $0x84] ss:$16 sps:$4 sm:$0xff]  }
  0x86   :  { %1114 = vmatpush1.bf16.msra.mxu0 %v4998_v6  ;;  %1237 = vmatpush1.bf16.msra.mxu1 %v4999_v7  ;;  %v5014_v17 = vld [vmem:[#allocation2 + $0x8c] ss:$16 sps:$4 sm:$0xff]   ;;  %v5016_v18 = vld [vmem:[#allocation2 + $0x80] ss:$16 sps:$4 sm:$0xff]   ;;  %v5017_v19 = vld [vmem:[#allocation2 + $0x88] ss:$16 sps:$4 sm:$0xff]  }
  0x87   :  { %1115 = vmatprep.subr.bf16.mxu0 %v5000_v8  ;;  %1238 = vmatprep.subr.bf16.mxu1 %v5002_v9  ;;  %v5018_v20 = vld [vmem:[#allocation2 + $0xa4] ss:$16 sps:$4 sm:$0xff]   ;;  %v5020_v21 = vld [vmem:[#allocation2 + $0xac] ss:$16 sps:$4 sm:$0xff]   ;;  %v5022_v22 = vld [vmem:[#allocation2 + $0xa0] ss:$16 sps:$4 sm:$0xff]  }
  0x88   :  { %v5023_v23 = vld [vmem:[#allocation2 + $0xa8] ss:$16 sps:$4 sm:$0xff]   ;;  %v5024_v24 = vld [vmem:[#allocation2 + $0xc4] ss:$16 sps:$4 sm:$0xff]   ;;  %v5026_v25 = vld [vmem:[#allocation2 + $0xcc] ss:$16 sps:$4 sm:$0xff]  }
  0x89   :  { %v5028_v26 = vld [vmem:[#allocation2 + $0xc0] ss:$16 sps:$4 sm:$0xff]   ;;  %v5029_v27 = vld [vmem:[#allocation2 + $0xc8] ss:$16 sps:$4 sm:$0xff]   ;;  %v5030_v28 = vld [vmem:[#allocation2 + $0xe4] ss:$16 sps:$4 sm:$0xff]  }
  0x8a   :  { %1116 = vmatpush1.bf16.msra.mxu0 %v5004_v10  ;;  %1239 = vmatpush1.bf16.msra.mxu1 %v5005_v11  ;;  %v5032_v29 = vld [vmem:[#allocation2 + $0xec] ss:$16 sps:$4 sm:$0xff]   ;;  %v5034_v30 = vld [vmem:[#allocation2 + $0xe0] ss:$16 sps:$4 sm:$0xff]   ;;  %v5035_v31 = vld [vmem:[#allocation2 + $0xe8] ss:$16 sps:$4 sm:$0xff]  }
  0x8b   :  { %1117 = vmatprep.subr.bf16.mxu0 %v5006_v12  ;;  %1240 = vmatprep.subr.bf16.mxu1 %v5008_v13  ;;  %v5036_v32 = vld [vmem:[#allocation2 + $0x104] ss:$16 sps:$4 sm:$0xff]   ;;  %v5038_v33 = vld [vmem:[#allocation2 + $0x10c] ss:$16 sps:$4 sm:$0xff]   ;;  %v5040_v34 = vld [vmem:[#allocation2 + $0x100] ss:$16 sps:$4 sm:$0xff]  }
  0x8c   :  { %v5041_v35 = vld [vmem:[#allocation2 + $0x108] ss:$16 sps:$4 sm:$0xff]   ;;  %v5042_v36 = vld [vmem:[#allocation2 + $0x124] ss:$16 sps:$4 sm:$0xff]   ;;  %v5044_v37 = vld [vmem:[#allocation2 + $0x12c] ss:$16 sps:$4 sm:$0xff]  }
  0x8d   :  { %v5046_v38 = vld [vmem:[#allocation2 + $0x120] ss:$16 sps:$4 sm:$0xff]   ;;  %v5047_v39 = vld [vmem:[#allocation2 + $0x128] ss:$16 sps:$4 sm:$0xff]   ;;  %v5048_v40 = vld [vmem:[#allocation2 + $0x144] ss:$16 sps:$4 sm:$0xff]  }
  0x8e   :  { %1118 = vmatpush1.bf16.msra.mxu0 %v5010_v14  ;;  %1241 = vmatpush1.bf16.msra.mxu1 %v5011_v15  ;;  %v5050_v41 = vld [vmem:[#allocation2 + $0x14c] ss:$16 sps:$4 sm:$0xff]   ;;  %v5052_v42 = vld [vmem:[#allocation2 + $0x140] ss:$16 sps:$4 sm:$0xff]   ;;  %v5053_v43 = vld [vmem:[#allocation2 + $0x148] ss:$16 sps:$4 sm:$0xff]  }
  0x8f   :  { %1119 = vmatprep.subr.bf16.mxu0 %v5012_v16  ;;  %1242 = vmatprep.subr.bf16.mxu1 %v5014_v17  ;;  %v5054_v44 = vld [vmem:[#allocation2 + $0x164] ss:$16 sps:$4 sm:$0xff]   ;;  %v5056_v45 = vld [vmem:[#allocation2 + $0x16c] ss:$16 sps:$4 sm:$0xff]   ;;  %v5058_v47 = vld [vmem:[#allocation2 + $0x160] ss:$16 sps:$4 sm:$0xff]  }
  0x90   :  { %v142_v46 = vld [vmem:[%s6281_s0 + $0x8] sm:$0xff]  ;;  %v5060_v50 = vld [vmem:[#allocation2 + $0x184] ss:$16 sps:$4 sm:$0xff]   ;;  %v5064_v52 = vld [vmem:[#allocation2 + $0x180] ss:$16 sps:$4 sm:$0xff]   ;;  %vm5947_vm0 = vmmov 0  }
  0x91   :  { %v147_v48 = vpack.c.bf16 %v142_v46, %v142_v46  ;;  %v5059_v49 = vld [vmem:[#allocation2 + $0x168] ss:$16 sps:$4 sm:$0xff]   ;;  %v5062_v51 = vld [vmem:[#allocation2 + $0x18c] ss:$16 sps:$4 sm:$0xff]   ;;  %v5066_v54 = vld [vmem:[#allocation2 + $0x1a4] ss:$16 sps:$4 sm:$0xff]  }
  0x92   :  { %1120 = vmatpush1.bf16.msra.mxu0 %v5016_v18  ;;  %1243 = vmatpush1.bf16.msra.mxu1 %v5017_v19  ;;  %v5065_v53 = vld [vmem:[#allocation2 + $0x188] ss:$16 sps:$4 sm:$0xff]   ;;  %v5068_v55 = vld [vmem:[#allocation2 + $0x1ac] ss:$16 sps:$4 sm:$0xff]   ;;  %v5070_v56 = vld [vmem:[#allocation2 + $0x1a0] ss:$16 sps:$4 sm:$0xff]  }
  0x93   :  { %1121 = vmatprep.subr.bf16.mxu0 %v5018_v20  ;;  %1244 = vmatprep.subr.bf16.mxu1 %v5020_v21  ;;  %v5071_v57 = vld [vmem:[#allocation2 + $0x1a8] ss:$16 sps:$4 sm:$0xff]   ;;  %v5072_v58 = vld [vmem:[#allocation2 + $0x1c4] ss:$16 sps:$4 sm:$0xff]   ;;  %v5074_v59 = vld [vmem:[#allocation2 + $0x1cc] ss:$16 sps:$4 sm:$0xff]  }
  0x94   :  { %1143 = vmatprep.mubr.bf16.mxu0 %v147_v48  ;;  %1266 = vmatprep.mubr.bf16.mxu1 %v147_v48  ;;  %v5076_v60 = vld [vmem:[#allocation2 + $0x1c0] ss:$16 sps:$4 sm:$0xff]   ;;  %v5077_v61 = vld [vmem:[#allocation2 + $0x1c8] ss:$16 sps:$4 sm:$0xff]   ;;  %v5078_v62 = vld [vmem:[#allocation2 + $0x1e4] ss:$16 sps:$4 sm:$0xff]  }
  0x95   :  { %v5080_v63 = vld [vmem:[#allocation2 + $0x1ec] ss:$16 sps:$4 sm:$0xff]   ;;  %v5082_v0 = vld [vmem:[#allocation2 + $0x1e0] ss:$16 sps:$4 sm:$0xff]   ;;  %v5083_v1 = vld [vmem:[#allocation2 + $0x1e8] ss:$16 sps:$4 sm:$0xff]  }
  0x96   :  { %1122 = vmatpush1.bf16.msra.mxu0 %v5022_v22  ;;  %1245 = vmatpush1.bf16.msra.mxu1 %v5023_v23  ;;  %v141_v2 = vld [vmem:[%s6281_s0] sm:$0xff]  ;;  %v5089_v4 = vld [vmem:[#allocation2 + $0x20c] ss:$16 sps:$4 sm:$0xff]   ;;  %v5087_v7 = vld [vmem:[#allocation2 + $0x208] ss:$16 sps:$4 sm:$0xff]   ;;  %vm2143_vm1 = vcmask 523264  }
  0x97   :  { %1123 = vmatprep.subr.bf16.mxu0 %v5024_v24  ;;  %1246 = vmatprep.subr.bf16.mxu1 %v5026_v25  ;;  %v5086_v3 = vld [vmem:[#allocation2 + $0x204] ss:$16 sps:$4 sm:$0xff]   ;;  %v146_v5 = vpack.c.bf16 %v141_v2, %v141_v2  ;;  %v5084_v6 = vld [vmem:[#allocation2 + $0x200] ss:$16 sps:$4 sm:$0xff]   ;;  %v5095_v9 = vld [vmem:[#allocation2 + $0x22c] ss:$16 sps:$4 sm:$0xff]  }
  0x98   :  { %v5092_v8 = vld [vmem:[#allocation2 + $0x224] ss:$16 sps:$4 sm:$0xff]   ;;  %v5090_v10 = vld [vmem:[#allocation2 + $0x220] ss:$16 sps:$4 sm:$0xff]   ;;  %v5093_v11 = vld [vmem:[#allocation2 + $0x228] ss:$16 sps:$4 sm:$0xff]  }
  0x99   :  { %v5098_v12 = vld [vmem:[#allocation2 + $0x244] ss:$16 sps:$4 sm:$0xff]   ;;  %v5101_v13 = vld [vmem:[#allocation2 + $0x24c] ss:$16 sps:$4 sm:$0xff]   ;;  %v5096_v14 = vld [vmem:[#allocation2 + $0x240] ss:$16 sps:$4 sm:$0xff]  }
  0x9a   :  { %1124 = vmatpush1.bf16.msra.mxu0 %v5028_v26  ;;  %1247 = vmatpush1.bf16.msra.mxu1 %v5029_v27  ;;  %v5099_v15 = vld [vmem:[#allocation2 + $0x248] ss:$16 sps:$4 sm:$0xff]   ;;  %v5104_v16 = vld [vmem:[#allocation2 + $0x264] ss:$16 sps:$4 sm:$0xff]   ;;  %v5107_v17 = vld [vmem:[#allocation2 + $0x26c] ss:$16 sps:$4 sm:$0xff]  }
  0x9b   :  { %1125 = vmatprep.subr.bf16.mxu0 %v5030_v28  ;;  %1248 = vmatprep.subr.bf16.mxu1 %v5032_v29  ;;  %v5102_v18 = vld [vmem:[#allocation2 + $0x260] ss:$16 sps:$4 sm:$0xff]   ;;  %v5105_v19 = vld [vmem:[#allocation2 + $0x268] ss:$16 sps:$4 sm:$0xff]   ;;  %v5110_v20 = vld [vmem:[#allocation2 + $0x284] ss:$16 sps:$4 sm:$0xff]  }
  0x9c   :  { %v5113_v21 = vld [vmem:[#allocation2 + $0x28c] ss:$16 sps:$4 sm:$0xff]   ;;  %v5108_v22 = vld [vmem:[#allocation2 + $0x280] ss:$16 sps:$4 sm:$0xff]   ;;  %v5111_v23 = vld [vmem:[#allocation2 + $0x288] ss:$16 sps:$4 sm:$0xff]  }
  0x9d   :  { %v5116_v24 = vld [vmem:[#allocation2 + $0x2a4] ss:$16 sps:$4 sm:$0xff]   ;;  %v5119_v25 = vld [vmem:[#allocation2 + $0x2ac] ss:$16 sps:$4 sm:$0xff]   ;;  %v5114_v26 = vld [vmem:[#allocation2 + $0x2a0] ss:$16 sps:$4 sm:$0xff]  }
  0x9e   :  { %1126 = vmatpush1.bf16.msra.mxu0 %v5034_v30  ;;  %1249 = vmatpush1.bf16.msra.mxu1 %v5035_v31  ;;  %v5117_v27 = vld [vmem:[#allocation2 + $0x2a8] ss:$16 sps:$4 sm:$0xff]   ;;  %v5122_v28 = vld [vmem:[#allocation2 + $0x2c4] ss:$16 sps:$4 sm:$0xff]   ;;  %v5125_v29 = vld [vmem:[#allocation2 + $0x2cc] ss:$16 sps:$4 sm:$0xff]  }
  0x9f   :  { %1127 = vmatprep.subr.bf16.mxu0 %v5036_v32  ;;  %1250 = vmatprep.subr.bf16.mxu1 %v5038_v33  ;;  %v144_v30 = vld [vmem:[%s6281_s0 + $0x18] sm:$0xff]  ;;  %v5120_v31 = vld [vmem:[#allocation2 + $0x2c0] ss:$16 sps:$4 sm:$0xff]   ;;  %v5146_v46 = vld [vmem:[#allocation2 + $0x344] ss:$16 sps:$4 sm:$0xff]   ;;  %vm2214_vm2 = vcmask 261120  }
  0xa0   :  { %v149_v32 = vpack.c.bf16 %v144_v30, %v144_v30  ;;  %v5123_v33 = vld [vmem:[#allocation2 + $0x2c8] ss:$16 sps:$4 sm:$0xff]   ;;  %v5144_v48 = vld [vmem:[#allocation2 + $0x340] ss:$16 sps:$4 sm:$0xff]   ;;  %v5176_v2 = vld [vmem:[#allocation2 + $0x3e4] ss:$16 sps:$4 sm:$0xff]  }
  0xa1   :  { %v5215_v30 = vld [vmem:[#allocation2 + $0x4ac] ss:$16 sps:$4 sm:$0xff]  }
  0xa2   :  { %1128 = vmatpush1.bf16.msra.mxu0 %v5040_v34  ;;  %1251 = vmatpush1.bf16.msra.mxu1 %v5041_v35  ;;  %v5128_v34 = vld [vmem:[#allocation2 + $0x2e4] ss:$16 sps:$4 sm:$0xff]   ;;  %v5131_v35 = vld [vmem:[#allocation2 + $0x2ec] ss:$16 sps:$4 sm:$0xff]  }
  0xa3   :  { %1129 = vmatprep.subr.bf16.mxu0 %v5042_v36  ;;  %1252 = vmatprep.subr.bf16.mxu1 %v5044_v37  ;;  %v5126_v36 = vld [vmem:[#allocation2 + $0x2e0] ss:$16 sps:$4 sm:$0xff]   ;;  %v5129_v37 = vld [vmem:[#allocation2 + $0x2e8] ss:$16 sps:$4 sm:$0xff]  }
  0xa6   :  { %1130 = vmatpush1.bf16.msra.mxu0 %v5046_v38  ;;  %1253 = vmatpush1.bf16.msra.mxu1 %v5047_v39  ;;  %v5134_v38 = vld [vmem:[#allocation2 + $0x304] ss:$16 sps:$4 sm:$0xff]   ;;  %v5137_v39 = vld [vmem:[#allocation2 + $0x30c] ss:$16 sps:$4 sm:$0xff]  }
  0xa7   :  { %1131 = vmatprep.subr.bf16.mxu0 %v5048_v40  ;;  %1254 = vmatprep.subr.bf16.mxu1 %v5050_v41  ;;  %v5132_v40 = vld [vmem:[#allocation2 + $0x300] ss:$16 sps:$4 sm:$0xff]   ;;  %v5135_v41 = vld [vmem:[#allocation2 + $0x308] ss:$16 sps:$4 sm:$0xff]  }
  0xaa   :  { %1132 = vmatpush1.bf16.msra.mxu0 %v5052_v42  ;;  %1255 = vmatpush1.bf16.msra.mxu1 %v5053_v43  ;;  %v5140_v42 = vld [vmem:[#allocation2 + $0x324] ss:$16 sps:$4 sm:$0xff]   ;;  %v5143_v43 = vld [vmem:[#allocation2 + $0x32c] ss:$16 sps:$4 sm:$0xff]  }
  0xab   :  { %1133 = vmatprep.subr.bf16.mxu0 %v5054_v44  ;;  %1256 = vmatprep.subr.bf16.mxu1 %v5056_v45  ;;  %v5138_v44 = vld [vmem:[#allocation2 + $0x320] ss:$16 sps:$4 sm:$0xff]   ;;  %v5141_v45 = vld [vmem:[#allocation2 + $0x328] ss:$16 sps:$4 sm:$0xff]  }
  0xae   :  { %1134 = vmatpush1.bf16.msra.mxu0 %v5058_v47  ;;  %1257 = vmatpush1.bf16.msra.mxu1 %v5059_v49  ;;  %v5149_v47 = vld [vmem:[#allocation2 + $0x34c] ss:$16 sps:$4 sm:$0xff]   ;;  %v5147_v49 = vld [vmem:[#allocation2 + $0x348] ss:$16 sps:$4 sm:$0xff]  }
  0xaf   :  { %1135 = vmatprep.subr.bf16.mxu0 %v5060_v50  ;;  %1258 = vmatprep.subr.bf16.mxu1 %v5062_v51  ;;  %v5152_v50 = vld [vmem:[#allocation2 + $0x364] ss:$16 sps:$4 sm:$0xff]   ;;  %v5155_v51 = vld [vmem:[#allocation2 + $0x36c] ss:$16 sps:$4 sm:$0xff]  }
  0xb2   :  { %1136 = vmatpush1.bf16.msra.mxu0 %v5064_v52  ;;  %1259 = vmatpush1.bf16.msra.mxu1 %v5065_v53  ;;  %v5150_v52 = vld [vmem:[#allocation2 + $0x360] ss:$16 sps:$4 sm:$0xff]   ;;  %v5153_v53 = vld [vmem:[#allocation2 + $0x368] ss:$16 sps:$4 sm:$0xff]  }
  0xb3   :  { %1137 = vmatprep.subr.bf16.mxu0 %v5066_v54  ;;  %1260 = vmatprep.subr.bf16.mxu1 %v5068_v55  ;;  %v5158_v54 = vld [vmem:[#allocation2 + $0x384] ss:$16 sps:$4 sm:$0xff]   ;;  %v5161_v55 = vld [vmem:[#allocation2 + $0x38c] ss:$16 sps:$4 sm:$0xff]  }
  0xb6   :  { %1138 = vmatpush1.bf16.msra.mxu0 %v5070_v56  ;;  %1261 = vmatpush1.bf16.msra.mxu1 %v5071_v57  ;;  %v5156_v56 = vld [vmem:[#allocation2 + $0x380] ss:$16 sps:$4 sm:$0xff]   ;;  %v5159_v57 = vld [vmem:[#allocation2 + $0x388] ss:$16 sps:$4 sm:$0xff]  }
  0xb7   :  { %1139 = vmatprep.subr.bf16.mxu0 %v5072_v58  ;;  %1262 = vmatprep.subr.bf16.mxu1 %v5074_v59  ;;  %v5164_v58 = vld [vmem:[#allocation2 + $0x3a4] ss:$16 sps:$4 sm:$0xff]   ;;  %v5167_v59 = vld [vmem:[#allocation2 + $0x3ac] ss:$16 sps:$4 sm:$0xff]  }
  0xba   :  { %1140 = vmatpush1.bf16.msra.mxu0 %v5076_v60  ;;  %1263 = vmatpush1.bf16.msra.mxu1 %v5077_v61  ;;  %v5162_v60 = vld [vmem:[#allocation2 + $0x3a0] ss:$16 sps:$4 sm:$0xff]   ;;  %v5165_v61 = vld [vmem:[#allocation2 + $0x3a8] ss:$16 sps:$4 sm:$0xff]  }
  0xbb   :  { %1141 = vmatprep.subr.bf16.mxu0 %v5078_v62  ;;  %1264 = vmatprep.subr.bf16.mxu1 %v5080_v63  ;;  %v5170_v62 = vld [vmem:[#allocation2 + $0x3c4] ss:$16 sps:$4 sm:$0xff]   ;;  %v5173_v63 = vld [vmem:[#allocation2 + $0x3cc] ss:$16 sps:$4 sm:$0xff]  }
  0xbe   :  { %1142 = vmatpush1.bf16.msra.mxu0 %v5082_v0  ;;  %1265 = vmatpush1.bf16.msra.mxu1 %v5083_v1  ;;  %v5168_v0 = vld [vmem:[#allocation2 + $0x3c0] ss:$16 sps:$4 sm:$0xff]   ;;  %v5171_v1 = vld [vmem:[#allocation2 + $0x3c8] ss:$16 sps:$4 sm:$0xff]  }
  0xbf   :  { %1152 = vmatprep.subr.bf16.mxu0 %v5086_v3  ;;  %1275 = vmatprep.subr.bf16.mxu1 %v5089_v4  ;;  %v5179_v3 = vld [vmem:[#allocation2 + $0x3ec] ss:$16 sps:$4 sm:$0xff]   ;;  %v5174_v4 = vld [vmem:[#allocation2 + $0x3e0] ss:$16 sps:$4 sm:$0xff]  }
  0xc1   :  { %1144 = vmatmul.mubr.bf16.vlgmr.msra.gmra.mrb[0].mxu0 %v146_v5  ;;  %1267 = vmatmul.mubr.bf16.vlgmr.msra.gmra.mrb[0].mxu1 %v146_v5  ;;  %v5177_v5 = vld [vmem:[#allocation2 + $0x3e8] ss:$16 sps:$4 sm:$0xff]  }
  0xc2   :  { %1153 = vmatpush1.bf16.msra.mxu0 %v5084_v6  ;;  %1276 = vmatpush1.bf16.msra.mxu1 %v5087_v7  ;;  %v143_v6 = vld [vmem:[%s6281_s0 + $0x10] sm:$0xff] }
  0xc3   :  { %1154 = vmatprep.subr.bf16.mxu0 %v5092_v8  ;;  %1277 = vmatprep.subr.bf16.mxu1 %v5095_v9  ;;  %v5182_v7 = vld [vmem:[#allocation2 + $0x404] ss:$16 sps:$4 sm:$0xff]   ;;  %v5185_v8 = vld [vmem:[#allocation2 + $0x40c] ss:$16 sps:$4 sm:$0xff]   ;;  %v5180_v9 = vld [vmem:[#allocation2 + $0x400] ss:$16 sps:$4 sm:$0xff]  }
  0xc4   :  { %1184 = vmatprep.mubr.bf16.mxu0 %v149_v32  ;;  %1307 = vmatprep.mubr.bf16.mxu1 %v149_v32  ;;  %v5213_v32 = vld [vmem:[#allocation2 + $0x4a8] ss:$16 sps:$4 sm:$0xff]  }
  0xc6   :  { %1155 = vmatpush1.bf16.msra.mxu0 %v5090_v10  ;;  %1278 = vmatpush1.bf16.msra.mxu1 %v5093_v11  ;;  %v5183_v10 = vld [vmem:[#allocation2 + $0x408] ss:$16 sps:$4 sm:$0xff]   ;;  %v148_v11 = vpack.c.bf16 %v143_v6, %v143_v6 }
  0xc7   :  { %1156 = vmatprep.subr.bf16.mxu0 %v5098_v12  ;;  %1279 = vmatprep.subr.bf16.mxu1 %v5101_v13  ;;  %v5188_v12 = vld [vmem:[#allocation2 + $0x424] ss:$16 sps:$4 sm:$0xff]   ;;  %v5191_v13 = vld [vmem:[#allocation2 + $0x42c] ss:$16 sps:$4 sm:$0xff]   ;;  %v5267_v6 = vld [vmem:[#allocation5 + $0xd0] ss:$8 sps:$4 sm:$0xff]  }
  0xca   :  { %1157 = vmatpush1.bf16.msra.mxu0 %v5096_v14  ;;  %1280 = vmatpush1.bf16.msra.mxu1 %v5099_v15  ;;  %v5186_v14 = vld [vmem:[#allocation2 + $0x420] ss:$16 sps:$4 sm:$0xff]   ;;  %v5189_v15 = vld [vmem:[#allocation2 + $0x428] ss:$16 sps:$4 sm:$0xff]  }
  0xcb   :  { %1158 = vmatprep.subr.bf16.mxu0 %v5104_v16  ;;  %1281 = vmatprep.subr.bf16.mxu1 %v5107_v17  ;;  %v5194_v16 = vld [vmem:[#allocation2 + $0x444] ss:$16 sps:$4 sm:$0xff]   ;;  %v5197_v17 = vld [vmem:[#allocation2 + $0x44c] ss:$16 sps:$4 sm:$0xff]  }
  0xce   :  { %1159 = vmatpush1.bf16.msra.mxu0 %v5102_v18  ;;  %1282 = vmatpush1.bf16.msra.mxu1 %v5105_v19  ;;  %v5192_v18 = vld [vmem:[#allocation2 + $0x440] ss:$16 sps:$4 sm:$0xff]   ;;  %v5195_v19 = vld [vmem:[#allocation2 + $0x448] ss:$16 sps:$4 sm:$0xff]  }
  0xcf   :  { %1160 = vmatprep.subr.bf16.mxu0 %v5110_v20  ;;  %1283 = vmatprep.subr.bf16.mxu1 %v5113_v21  ;;  %v5945_v20 = vmov 0   ;;  %v5200_v21 = vld [vmem:[#allocation2 + $0x464] ss:$16 sps:$4 sm:$0xff]  }
  0xd2   :  { %1161 = vmatpush1.bf16.msra.mxu0 %v5108_v22  ;;  %1284 = vmatpush1.bf16.msra.mxu1 %v5111_v23  ;;  %v5203_v22 = vld [vmem:[#allocation2 + $0x46c] ss:$16 sps:$4 sm:$0xff]   ;;  %v5198_v23 = vld [vmem:[#allocation2 + $0x460] ss:$16 sps:$4 sm:$0xff]  }
  0xd3   :  { %1162 = vmatprep.subr.bf16.mxu0 %v5116_v24  ;;  %1285 = vmatprep.subr.bf16.mxu1 %v5119_v25  ;;  %v5201_v24 = vld [vmem:[#allocation2 + $0x468] ss:$16 sps:$4 sm:$0xff]   ;;  %v5206_v25 = vld [vmem:[#allocation2 + $0x484] ss:$16 sps:$4 sm:$0xff]  }
  0xd6   :  { %1163 = vmatpush1.bf16.msra.mxu0 %v5114_v26  ;;  %1286 = vmatpush1.bf16.msra.mxu1 %v5117_v27  ;;  %v5209_v26 = vld [vmem:[#allocation2 + $0x48c] ss:$16 sps:$4 sm:$0xff]   ;;  %v5204_v27 = vld [vmem:[#allocation2 + $0x480] ss:$16 sps:$4 sm:$0xff]  }
  0xd7   :  { %1164 = vmatprep.subr.bf16.mxu0 %v5122_v28  ;;  %1287 = vmatprep.subr.bf16.mxu1 %v5125_v29  ;;  %v5207_v28 = vld [vmem:[#allocation2 + $0x488] ss:$16 sps:$4 sm:$0xff]   ;;  %v5212_v29 = vld [vmem:[#allocation2 + $0x4a4] ss:$16 sps:$4 sm:$0xff]  }
  0xda   :  { %1165 = vmatpush1.bf16.msra.mxu0 %v5120_v31  ;;  %1288 = vmatpush1.bf16.msra.mxu1 %v5123_v33  ;;  %v5210_v31 = vld [vmem:[#allocation2 + $0x4a0] ss:$16 sps:$4 sm:$0xff]   ;;  %v5218_v33 = vld [vmem:[#allocation2 + $0x4c4] ss:$16 sps:$4 sm:$0xff]  }
  0xdb   :  { %1166 = vmatprep.subr.bf16.mxu0 %v5128_v34  ;;  %1289 = vmatprep.subr.bf16.mxu1 %v5131_v35  ;;  %v5221_v34 = vld [vmem:[#allocation2 + $0x4cc] ss:$16 sps:$4 sm:$0xff]   ;;  %v5216_v35 = vld [vmem:[#allocation2 + $0x4c0] ss:$16 sps:$4 sm:$0xff]  }
  0xde   :  { %1167 = vmatpush1.bf16.msra.mxu0 %v5126_v36  ;;  %1290 = vmatpush1.bf16.msra.mxu1 %v5129_v37  ;;  %v5219_v36 = vld [vmem:[#allocation2 + $0x4c8] ss:$16 sps:$4 sm:$0xff]   ;;  %v5224_v37 = vld [vmem:[#allocation2 + $0x4e4] ss:$16 sps:$4 sm:$0xff]  }
  0xdf   :  { %1168 = vmatprep.subr.bf16.mxu0 %v5134_v38  ;;  %1291 = vmatprep.subr.bf16.mxu1 %v5137_v39  ;;  %v5227_v38 = vld [vmem:[#allocation2 + $0x4ec] ss:$16 sps:$4 sm:$0xff]   ;;  %v5222_v39 = vld [vmem:[#allocation2 + $0x4e0] ss:$16 sps:$4 sm:$0xff]  }
  0xe2   :  { %1169 = vmatpush1.bf16.msra.mxu0 %v5132_v40  ;;  %1292 = vmatpush1.bf16.msra.mxu1 %v5135_v41  ;;  %v5225_v40 = vld [vmem:[#allocation2 + $0x4e8] ss:$16 sps:$4 sm:$0xff]   ;;  %v145_v41 = vld [vmem:[%s6281_s0 + $0x20] sm:$0xff] }
  0xe3   :  { %1170 = vmatprep.subr.bf16.mxu0 %v5140_v42  ;;  %1293 = vmatprep.subr.bf16.mxu1 %v5143_v43  ;;  %v5230_v42 = vld [vmem:[#allocation5 + $0x4] ss:$8 sps:$4 sm:$0xff]   ;;  %v5228_v43 = vld [vmem:[#allocation5] ss:$8 sps:$4 sm:$0xff]  }
  0xe6   :  { %1171 = vmatpush1.bf16.msra.mxu0 %v5138_v44  ;;  %1294 = vmatpush1.bf16.msra.mxu1 %v5141_v45  ;;  %v150_v44 = vpack.c.bf16 %v145_v41, %v145_v41  ;;  %v5233_v45 = vld [vmem:[#allocation5 + $0x14] ss:$8 sps:$4 sm:$0xff]  }
  0xe7   :  { %1172 = vmatprep.subr.bf16.mxu0 %v5146_v46  ;;  %1295 = vmatprep.subr.bf16.mxu1 %v5149_v47  ;;  %v5231_v46 = vld [vmem:[#allocation5 + $0x10] ss:$8 sps:$4 sm:$0xff]   ;;  %v5236_v47 = vld [vmem:[#allocation5 + $0x24] ss:$8 sps:$4 sm:$0xff]  }
  0xea   :  { %1173 = vmatpush1.bf16.msra.mxu0 %v5144_v48  ;;  %1296 = vmatpush1.bf16.msra.mxu1 %v5147_v49  ;;  %v5234_v48 = vld [vmem:[#allocation5 + $0x20] ss:$8 sps:$4 sm:$0xff]   ;;  %v5239_v49 = vld [vmem:[#allocation5 + $0x34] ss:$8 sps:$4 sm:$0xff]  }
  0xeb   :  { %1174 = vmatprep.subr.bf16.mxu0 %v5152_v50  ;;  %1297 = vmatprep.subr.bf16.mxu1 %v5155_v51  ;;  %v5237_v50 = vld [vmem:[#allocation5 + $0x30] ss:$8 sps:$4 sm:$0xff]   ;;  %v5242_v51 = vld [vmem:[#allocation5 + $0x44] ss:$8 sps:$4 sm:$0xff]  }
  0xee   :  { %1175 = vmatpush1.bf16.msra.mxu0 %v5150_v52  ;;  %1298 = vmatpush1.bf16.msra.mxu1 %v5153_v53  ;;  %v5240_v52 = vld [vmem:[#allocation5 + $0x40] ss:$8 sps:$4 sm:$0xff]   ;;  %v5245_v53 = vld [vmem:[#allocation5 + $0x54] ss:$8 sps:$4 sm:$0xff]  }
  0xef   :  { %1176 = vmatprep.subr.bf16.mxu0 %v5158_v54  ;;  %1299 = vmatprep.subr.bf16.mxu1 %v5161_v55  ;;  %v5243_v54 = vld [vmem:[#allocation5 + $0x50] ss:$8 sps:$4 sm:$0xff]   ;;  %v5248_v55 = vld [vmem:[#allocation5 + $0x64] ss:$8 sps:$4 sm:$0xff]  }
  0xf2   :  { %1177 = vmatpush1.bf16.msra.mxu0 %v5156_v56  ;;  %1300 = vmatpush1.bf16.msra.mxu1 %v5159_v57  ;;  %v5246_v56 = vld [vmem:[#allocation5 + $0x60] ss:$8 sps:$4 sm:$0xff]   ;;  %v5251_v57 = vld [vmem:[#allocation5 + $0x74] ss:$8 sps:$4 sm:$0xff]  }
  0xf3   :  { %1178 = vmatprep.subr.bf16.mxu0 %v5164_v58  ;;  %1301 = vmatprep.subr.bf16.mxu1 %v5167_v59  ;;  %v5249_v58 = vld [vmem:[#allocation5 + $0x70] ss:$8 sps:$4 sm:$0xff]   ;;  %v5254_v59 = vld [vmem:[#allocation5 + $0x84] ss:$8 sps:$4 sm:$0xff]  }
  0xf6   :  { %1179 = vmatpush1.bf16.msra.mxu0 %v5162_v60  ;;  %1302 = vmatpush1.bf16.msra.mxu1 %v5165_v61  ;;  %v5252_v60 = vld [vmem:[#allocation5 + $0x80] ss:$8 sps:$4 sm:$0xff]   ;;  %v5257_v61 = vld [vmem:[#allocation5 + $0x94] ss:$8 sps:$4 sm:$0xff]  }
  0xf7   :  { %1180 = vmatprep.subr.bf16.mxu0 %v5170_v62  ;;  %1303 = vmatprep.subr.bf16.mxu1 %v5173_v63  ;;  %v5255_v62 = vld [vmem:[#allocation5 + $0x90] ss:$8 sps:$4 sm:$0xff]   ;;  %v5260_v63 = vld [vmem:[#allocation5 + $0xa4] ss:$8 sps:$4 sm:$0xff]  }
  0xfa   :  { %1181 = vmatpush1.bf16.msra.mxu0 %v5168_v0  ;;  %1304 = vmatpush1.bf16.msra.mxu1 %v5171_v1  ;;  %v5258_v0 = vld [vmem:[#allocation5 + $0xa0] ss:$8 sps:$4 sm:$0xff]   ;;  %v5263_v1 = vld [vmem:[#allocation5 + $0xb4] ss:$8 sps:$4 sm:$0xff]  }
  0xfb   :  { %1182 = vmatprep.subr.bf16.mxu0 %v5176_v2  ;;  %1305 = vmatprep.subr.bf16.mxu1 %v5179_v3  ;;  %v5261_v2 = vld [vmem:[#allocation5 + $0xb0] ss:$8 sps:$4 sm:$0xff]   ;;  %v5266_v3 = vld [vmem:[#allocation5 + $0xc4] ss:$8 sps:$4 sm:$0xff]  }
  0xfe   :  { %1183 = vmatpush1.bf16.msra.mxu0 %v5174_v4  ;;  %1306 = vmatpush1.bf16.msra.mxu1 %v5177_v5  ;;  %v5264_v4 = vld [vmem:[#allocation5 + $0xc0] ss:$8 sps:$4 sm:$0xff]   ;;  %v5269_v5 = vld [vmem:[#allocation5 + $0xd4] ss:$8 sps:$4 sm:$0xff]  }
  0xff   :  { %1193 = vmatprep.subr.bf16.mxu0 %v5182_v7  ;;  %1316 = vmatprep.subr.bf16.mxu1 %v5185_v8  ;;  %v5272_v7 = vld [vmem:[#allocation5 + $0xe4] ss:$8 sps:$4 sm:$0xff]   ;;  %v5270_v8 = vld [vmem:[#allocation5 + $0xe0] ss:$8 sps:$4 sm:$0xff]  }
 0x101   :  { %1185 = vmatmul.mubr.bf16.vlgmr.msra.gmra.mrb[0].mxu0 %v148_v11  ;;  %1308 = vmatmul.mubr.bf16.vlgmr.msra.gmra.mrb[0].mxu1 %v148_v11  ;;  %v5278_v11 = vld [vmem:[#allocation5 + $0x104] ss:$8 sps:$4 sm:$0xff]  }
 0x102   :  { %1194 = vmatpush1.bf16.msra.mxu0 %v5180_v9  ;;  %1317 = vmatpush1.bf16.msra.mxu1 %v5183_v10  ;;  %v5275_v9 = vld [vmem:[#allocation5 + $0xf4] ss:$8 sps:$4 sm:$0xff]   ;;  %v5273_v10 = vld [vmem:[#allocation5 + $0xf0] ss:$8 sps:$4 sm:$0xff]  }
 0x103   :  { %1195 = vmatprep.subr.bf16.mxu0 %v5188_v12  ;;  %1318 = vmatprep.subr.bf16.mxu1 %v5191_v13  ;;  %v5324_v12 = vld [vmem:[#allocation7 + $0x40] sm:$0xff]  }
 0x104   :  { %1225 = vmatprep.mubr.bf16.mxu0 %v5945_v20  ;;  %1348 = vmatprep.mubr.bf16.mxu1 %v5945_v20  ;;  %v5325_v13 = vld [vmem:[#allocation7] sm:$0xff]  }
 0x106   :  { %1196 = vmatpush1.bf16.msra.mxu0 %v5186_v14  ;;  %1319 = vmatpush1.bf16.msra.mxu1 %v5189_v15  ;;  %v5326_v14 = vld [vmem:[#allocation7 + $0x48] sm:$0xff]  }
 0x107   :  { %1197 = vmatprep.subr.bf16.mxu0 %v5194_v16  ;;  %1320 = vmatprep.subr.bf16.mxu1 %v5197_v17  ;;  %v5327_v15 = vld [vmem:[#allocation7 + $0x8] sm:$0xff]   ;;  %v5328_v16 = vld [vmem:[#allocation7 + $0x50] sm:$0xff]  }
 0x108   :  { %v5329_v17 = vld [vmem:[#allocation7 + $0x10] sm:$0xff]  }
 0x10a   :  { %1198 = vmatpush1.bf16.msra.mxu0 %v5192_v18  ;;  %1321 = vmatpush1.bf16.msra.mxu1 %v5195_v19  ;;  %v5330_v18 = vld [vmem:[#allocation7 + $0x58] sm:$0xff]  }
 0x10b   :  { %1199 = vmatprep.subr.bf16.mxu0 %v5200_v21  ;;  %1322 = vmatprep.subr.bf16.mxu1 %v5203_v22  ;;  %v5331_v19 = vld [vmem:[#allocation7 + $0x18] sm:$0xff]   ;;  %v5332_v21 = vld [vmem:[#allocation7 + $0x60] sm:$0xff]  }
 0x10c   :  { %v5333_v22 = vld [vmem:[#allocation7 + $0x20] sm:$0xff]  }
 0x10e   :  { %1200 = vmatpush1.bf16.msra.mxu0 %v5198_v23  ;;  %1323 = vmatpush1.bf16.msra.mxu1 %v5201_v24  ;;  %v5334_v23 = vld [vmem:[#allocation7 + $0x68] sm:$0xff]  }
 0x10f   :  { %1201 = vmatprep.subr.bf16.mxu0 %v5206_v25  ;;  %1324 = vmatprep.subr.bf16.mxu1 %v5209_v26  ;;  %v5335_v24 = vld [vmem:[#allocation7 + $0x28] sm:$0xff]   ;;  %v5336_v25 = vld [vmem:[#allocation7 + $0x70] sm:$0xff]  }
 0x112   :  { %1202 = vmatpush1.bf16.msra.mxu0 %v5204_v27  ;;  %1325 = vmatpush1.bf16.msra.mxu1 %v5207_v28 }
 0x113   :  { %1203 = vmatprep.subr.bf16.mxu0 %v5212_v29  ;;  %1326 = vmatprep.subr.bf16.mxu1 %v5215_v30 }
 0x116   :  { %1204 = vmatpush1.bf16.msra.mxu0 %v5210_v31  ;;  %1327 = vmatpush1.bf16.msra.mxu1 %v5213_v32 }
 0x117   :  { %1205 = vmatprep.subr.bf16.mxu0 %v5218_v33  ;;  %1328 = vmatprep.subr.bf16.mxu1 %v5221_v34 }
 0x11a   :  { %1206 = vmatpush1.bf16.msra.mxu0 %v5216_v35  ;;  %1329 = vmatpush1.bf16.msra.mxu1 %v5219_v36 }
 0x11b   :  { %1207 = vmatprep.subr.bf16.mxu0 %v5224_v37  ;;  %1330 = vmatprep.subr.bf16.mxu1 %v5227_v38  ;;  %v5276_v38 = vld [vmem:[#allocation5 + $0x100] ss:$8 sps:$4 sm:$0xff]  }
 0x11e   :  { %1208 = vmatpush1.bf16.msra.mxu0 %v5222_v39  ;;  %1331 = vmatpush1.bf16.msra.mxu1 %v5225_v40  ;;  %v5281_v40 = vld [vmem:[#allocation5 + $0x114] ss:$8 sps:$4 sm:$0xff]  }
 0x11f   :  { %1749 = vmatprep.subr.bf16.mxu0 %v5230_v42  ;;  %4799 = vmatprep.subr.bf16.mxu1 %v5324_v12  ;;  %v5279_v42 = vld [vmem:[#allocation5 + $0x110] ss:$8 sps:$4 sm:$0xff]   ;;  %v5946_v12 = vmov 0.0  }
 0x121   :  { %1226 = vmatmul.mubr.bf16.vlgmr.msra.gmra.mrb[0].mxu0 %v150_v44  ;;  %1349 = vmatmul.mubr.bf16.vlgmr.msra.gmra.mrb[0].mxu1 %v150_v44  ;;  %v5282_v44 = vld [vmem:[#allocation5 + $0x120] ss:$8 sps:$4 sm:$0xff]  }
 0x122   :  { %1750 = vmatpush1.bf16.msra.mxu0 %v5228_v43  ;;  %4800 = vmatpush3.bf16.msra.mxu1 %v5325_v13  ;;  %v5284_v43 = vld [vmem:[#allocation5 + $0x124] ss:$8 sps:$4 sm:$0xff]  }
 0x123   :  { %1751 = vmatprep.subr.bf16.mxu0 %v5233_v45  ;;  %4801 = vmatprep.subr.bf16.mxu1 %v5326_v14  ;;  %v5287_v45 = vld [vmem:[#allocation5 + $0x134] ss:$8 sps:$4 sm:$0xff]  }
 0x126   :  { %1752 = vmatpush1.bf16.msra.mxu0 %v5231_v46  ;;  %4802 = vmatpush3.bf16.msra.mxu1 %v5327_v15  ;;  %v5285_v46 = vld [vmem:[#allocation5 + $0x130] ss:$8 sps:$4 sm:$0xff]  }
 0x127   :  { %1753 = vmatprep.subr.bf16.mxu0 %v5236_v47  ;;  %4803 = vmatprep.subr.bf16.mxu1 %v5328_v16  ;;  %v5290_v47 = vld [vmem:[#allocation5 + $0x144] ss:$8 sps:$4 sm:$0xff]  }
 0x12a   :  { %1754 = vmatpush1.bf16.msra.mxu0 %v5234_v48  ;;  %4804 = vmatpush3.bf16.msra.mxu1 %v5329_v17  ;;  %v5288_v48 = vld [vmem:[#allocation5 + $0x140] ss:$8 sps:$4 sm:$0xff]  }
 0x12b   :  { %1755 = vmatprep.subr.bf16.mxu0 %v5239_v49  ;;  %4805 = vmatprep.subr.bf16.mxu1 %v5330_v18  ;;  %v5293_v49 = vld [vmem:[#allocation5 + $0x154] ss:$8 sps:$4 sm:$0xff]  }
 0x12e   :  { %1756 = vmatpush1.bf16.msra.mxu0 %v5237_v50  ;;  %4806 = vmatpush3.bf16.msra.mxu1 %v5331_v19  ;;  %v5291_v50 = vld [vmem:[#allocation5 + $0x150] ss:$8 sps:$4 sm:$0xff]  }
 0x12f   :  { %1757 = vmatprep.subr.bf16.mxu0 %v5242_v51  ;;  %4807 = vmatprep.subr.bf16.mxu1 %v5332_v21  ;;  %v5296_v51 = vld [vmem:[#allocation5 + $0x164] ss:$8 sps:$4 sm:$0xff]  }
 0x130   :  { %v5340_v21 = vld [vmem:[%s6285_s4] sm:$0xff]  }
 0x132   :  { %1758 = vmatpush1.bf16.msra.mxu0 %v5240_v52  ;;  %4808 = vmatpush3.bf16.msra.mxu1 %v5333_v22  ;;  %v5294_v52 = vld [vmem:[#allocation5 + $0x160] ss:$8 sps:$4 sm:$0xff]  }
 0x133   :  { %1759 = vmatprep.subr.bf16.mxu0 %v5245_v53  ;;  %4809 = vmatprep.subr.bf16.mxu1 %v5334_v23  ;;  %v5299_v53 = vld [vmem:[#allocation5 + $0x174] ss:$8 sps:$4 sm:$0xff]   ;;  %v5341_v23 = vld [vmem:[%s6285_s4 + $0x8] sm:$0xff]  }
 0x136   :  { %1760 = vmatpush1.bf16.msra.mxu0 %v5243_v54  ;;  %4810 = vmatpush3.bf16.msra.mxu1 %v5335_v24  ;;  %v5297_v54 = vld [vmem:[#allocation5 + $0x170] ss:$8 sps:$4 sm:$0xff]  }
 0x137   :  { %1761 = vmatprep.subr.bf16.mxu0 %v5248_v55  ;;  %4811 = vmatprep.subr.bf16.mxu1 %v5336_v25  ;;  %v5302_v55 = vld [vmem:[#allocation5 + $0x184] ss:$8 sps:$4 sm:$0xff]   ;;  %v5342_v24 = vld [vmem:[%s6285_s4 + $0x10] sm:$0xff]   ;;  %v5343_v25 = vld [vmem:[%s6285_s4 + $0x18] sm:$0xff]  }
 0x13a   :  { %1762 = vmatpush1.bf16.msra.mxu0 %v5246_v56  ;;  %v5300_v56 = vld [vmem:[#allocation5 + $0x180] ss:$8 sps:$4 sm:$0xff]  }
 0x13b   :  { %1763 = vmatprep.subr.bf16.mxu0 %v5251_v57  ;;  %v5305_v57 = vld [vmem:[#allocation5 + $0x194] ss:$8 sps:$4 sm:$0xff]  }
 0x13e   :  { %1764 = vmatpush1.bf16.msra.mxu0 %v5249_v58  ;;  %v5303_v58 = vld [vmem:[#allocation5 + $0x190] ss:$8 sps:$4 sm:$0xff]  }
 0x13f   :  { %1765 = vmatprep.subr.bf16.mxu0 %v5254_v59  ;;  %v5308_v59 = vld [vmem:[#allocation5 + $0x1a4] ss:$8 sps:$4 sm:$0xff]  }
 0x142   :  { %1766 = vmatpush1.bf16.msra.mxu0 %v5252_v60  ;;  %v5306_v60 = vld [vmem:[#allocation5 + $0x1a0] ss:$8 sps:$4 sm:$0xff]  }
 0x143   :  { %1767 = vmatprep.subr.bf16.mxu0 %v5257_v61  ;;  %v5311_v61 = vld [vmem:[#allocation5 + $0x1b4] ss:$8 sps:$4 sm:$0xff]  }
 0x146   :  { %1768 = vmatpush1.bf16.msra.mxu0 %v5255_v62  ;;  %v5309_v62 = vld [vmem:[#allocation5 + $0x1b0] ss:$8 sps:$4 sm:$0xff]  }
 0x147   :  { %1769 = vmatprep.subr.bf16.mxu0 %v5260_v63  ;;  %v5314_v63 = vld [vmem:[#allocation5 + $0x1c4] ss:$8 sps:$4 sm:$0xff]  }
 0x14a   :  { %1770 = vmatpush1.bf16.msra.mxu0 %v5258_v0  ;;  %v5312_v0 = vld [vmem:[#allocation5 + $0x1c0] ss:$8 sps:$4 sm:$0xff]  }
 0x14b   :  { %1771 = vmatprep.subr.bf16.mxu0 %v5263_v1  ;;  %v5317_v1 = vld [vmem:[#allocation5 + $0x1d4] ss:$8 sps:$4 sm:$0xff]  }
 0x14e   :  { %1772 = vmatpush1.bf16.msra.mxu0 %v5261_v2  ;;  %v5315_v2 = vld [vmem:[#allocation5 + $0x1d0] ss:$8 sps:$4 sm:$0xff]  }
 0x14f   :  { %1773 = vmatprep.subr.bf16.mxu0 %v5266_v3  ;;  %v5320_v3 = vld [vmem:[#allocation5 + $0x1e4] ss:$8 sps:$4 sm:$0xff]  }
 0x152   :  { %1774 = vmatpush1.bf16.msra.mxu0 %v5264_v4  ;;  %v5318_v4 = vld [vmem:[#allocation5 + $0x1e0] ss:$8 sps:$4 sm:$0xff]  }
 0x153   :  { %1775 = vmatprep.subr.bf16.mxu0 %v5269_v5  ;;  %v5323_v5 = vld [vmem:[#allocation5 + $0x1f4] ss:$8 sps:$4 sm:$0xff]  }
 0x156   :  { %1776 = vmatpush1.bf16.msra.mxu0 %v5267_v6  ;;  %v5321_v6 = vld [vmem:[#allocation5 + $0x1f0] ss:$8 sps:$4 sm:$0xff]  }
 0x157   :  { %1777 = vmatprep.subr.bf16.mxu0 %v5272_v7 }
 0x15a   :  { %1778 = vmatpush1.bf16.msra.mxu0 %v5270_v8 }
 0x15b   :  { %1779 = vmatprep.subr.bf16.mxu0 %v5275_v9  ;;  %v5337_v9 = vld [vmem:[#allocation7 + $0x30] sm:$0xff]  }
 0x15c   :  { %4812 = vmatpush3.bf16.msra.mxu1 %v5337_v9 }
 0x15e   :  { %1780 = vmatpush1.bf16.msra.mxu0 %v5273_v10  ;;  %v5338_v10 = vld [vmem:[#allocation7 + $0x78] sm:$0xff]  }
 0x15f   :  { %1790 = vmatprep.subr.bf16.mxu0 %v5278_v11  ;;  %v5339_v11 = vld [vmem:[#allocation7 + $0x38] sm:$0xff]   ;;  %4813 = vmatprep.subr.bf16.mxu1 %v5338_v10 }
 0x160   :  { %4814 = vmatpush3.bf16.msra.mxu1 %v5339_v11  ;;  %v5358_v10 = vld [vmem:[#allocation10] ss:$8 sps:$4 sm:$0xff]  }
 0x161   :  { %4887 = vmatprep.subr.bf16.mxu1 %v5946_v12 }
 0x1f4   :  { %v1227_v26 = vpop.f32.mrb[0].mxu0  ;;  %v6148_v27 = vpop.f32.mrb[0].mxu1 }
 0x1f5   :  { %v1357_v28 = vmax.f32 %v1227_v26, 0.0  ;;  %v1229_v29 = vpop.f32.mrb[1].mxu0  ;;  %v1352_v30 = vpop.f32.mrb[1].mxu1  ;;  %v1359_v7 = vmax.f32 %v6148_v27, 0.0  ;;  %v5344_v26 = vld [vmem:[%s6285_s4 + $0x20] sm:$0xff]   ;;  %v5345_v27 = vld [vmem:[%s6285_s4 + $0x28] sm:$0xff]  }
 0x1f6   :  { %v1358_v31 = vmax.f32 %v1229_v29, 0.0  ;;  %v1360_v32 = vmax.f32 %v1352_v30, 0.0  ;;  %v1231_v33 = vpop.f32.mrb[2].mxu0  ;;  %v1354_v34 = vpop.f32.mrb[2].mxu1  ;;  %v5347_v29 = vld [vmem:[%s6285_s4 + $0x38] sm:$0xff]  }
 0x1f7   :  { %v1232_v35 = vpop.f32.mrb[3].mxu0  ;;  %v1355_v36 = vpop.f32.mrb[3].mxu1  ;;  %v1361_v39 = vpack.c.bf16 %v1357_v28, %v1357_v28  ;;  %v1363_v8 = vpack.c.bf16 %v1359_v7, %v1359_v7  ;;  %v5346_v28 = vld [vmem:[%s6285_s4 + $0x30] sm:$0xff]  }
 0x1f8   :  { %v1362_v37 = vpack.c.bf16 %v1358_v31, %v1358_v31  ;;  %v1364_v41 = vpack.c.bf16 %v1360_v32, %v1360_v32  ;;  %v5348_v36 = vld [vmem:[%s6286_s5] sm:$0xff]  }
 0x1fa   :  { %1781 = vmatprep.mubr.bf16.mxu0 %v1362_v37 }
 0x1fb   :  { %1782 = vmatmul.mubr.bf16.vlgmr.msra.gmra.mrb[4].mxu0 %v1361_v39  ;;  %v5350_v39 = vld [vmem:[%s6286_s5 + $0x10] sm:$0xff]  }
 0x1fc   :  { %1791 = vmatpush1.bf16.msra.mxu0 %v5276_v38  ;;  %1822 = vmatprep.mubr.bf16.mxu0 %v1364_v41  ;;  %v5349_v38 = vld [vmem:[%s6286_s5 + $0x8] sm:$0xff]  }
 0x1fd   :  { %1792 = vmatprep.subr.bf16.mxu0 %v5281_v40  ;;  %v5351_v40 = vld [vmem:[%s6286_s5 + $0x18] sm:$0xff]   ;;  %s5948_s5 = smov 96  }
 0x200   :  { %1793 = vmatpush1.bf16.msra.mxu0 %v5279_v42 }
 0x201   :  { %1794 = vmatprep.subr.bf16.mxu0 %v5284_v43 }
 0x204   :  { %1795 = vmatpush1.bf16.msra.mxu0 %v5282_v44 }
 0x205   :  { %1796 = vmatprep.subr.bf16.mxu0 %v5287_v45 }
 0x208   :  { %1797 = vmatpush1.bf16.msra.mxu0 %v5285_v46 }
 0x209   :  { %1798 = vmatprep.subr.bf16.mxu0 %v5290_v47  ;;  %v5352_v47 = vld [vmem:[#allocation8] sm:$0xff]  }
 0x20c   :  { %1799 = vmatpush1.bf16.msra.mxu0 %v5288_v48 }
 0x20d   :  { %1800 = vmatprep.subr.bf16.mxu0 %v5293_v49 }
 0x210   :  { %1801 = vmatpush1.bf16.msra.mxu0 %v5291_v50 }
 0x211   :  { %1802 = vmatprep.subr.bf16.mxu0 %v5296_v51 }
 0x214   :  { %1803 = vmatpush1.bf16.msra.mxu0 %v5294_v52 }
 0x215   :  { %1804 = vmatprep.subr.bf16.mxu0 %v5299_v53 }
 0x218   :  { %1805 = vmatpush1.bf16.msra.mxu0 %v5297_v54  ;;  %v5353_v54 = vld [vmem:[#allocation8 + $0x8] sm:$0xff]  }
 0x219   :  { %1806 = vmatprep.subr.bf16.mxu0 %v5302_v55 }
 0x21c   :  { %1807 = vmatpush1.bf16.msra.mxu0 %v5300_v56  ;;  %v2190_v56 = vld [vmem:[%s6292_s11] sm:$0xff] }
 0x21d   :  { %1808 = vmatprep.subr.bf16.mxu0 %v5305_v57 }
 0x220   :  { %1809 = vmatpush1.bf16.msra.mxu0 %v5303_v58 }
 0x221   :  { %1810 = vmatprep.subr.bf16.mxu0 %v5308_v59 }
 0x224   :  { %1811 = vmatpush1.bf16.msra.mxu0 %v5306_v60 }
 0x225   :  { %1812 = vmatprep.subr.bf16.mxu0 %v5311_v61  ;;  %v5354_v61 = vld [vmem:[%s6288_s7] sm:$0xff]  }
 0x228   :  { %1813 = vmatpush1.bf16.msra.mxu0 %v5309_v62  ;;  %v5355_v62 = vld [vmem:[%s6288_s7 + $0x8] sm:$0xff]  }
 0x229   :  { %1814 = vmatprep.subr.bf16.mxu0 %v5314_v63  ;;  %v5356_v63 = vld [vmem:[%s6288_s7 + $0x10] sm:$0xff]  }
 0x22c   :  { %1815 = vmatpush1.bf16.msra.mxu0 %v5312_v0  ;;  %v5357_v0 = vld [vmem:[%s6288_s7 + $0x18] sm:$0xff]   ;;  %s5949_s7 = smov [#allocation15]  }
 0x22d   :  { %1816 = vmatprep.subr.bf16.mxu0 %v5317_v1  ;;  %v5360_v1 = vld [vmem:[#allocation10 + $0x4] ss:$8 sps:$4 sm:$0xff]   ;;  %s4274_s1 = sshll.u32 %s5949_s7, 4  ;;  %s4275_s1 = int_to_ptr.vmem [resolvable:$true] %s4274_s1 }
 0x22e   :  { %s5874_s24 = scalar_lea.vmem %s4275_s1, 128  ;;  %p5879_p1 = scmp.lt.s32.totalorder %s4275_s1, %s4275_s1 }
 0x22f   :  { %p5875_p0 = scmp.ne.s32.totalorder %s4275_s1, %s5874_s24  ;;  %p5880_p2 = scmp.lt.s32.totalorder %s5874_s24, %s5874_s24 }
 0x230   :  { %1817 = vmatpush1.bf16.msra.mxu0 %v5315_v2 }
 0x231   :  { %1818 = vmatprep.subr.bf16.mxu0 %v5320_v3  ;;  %p5881_p3 = por %p5880_p2, %p5879_p1 }
 0x233   :  { %p5882_p4 = pnand %p5881_p3, %p5875_p0 }
 0x234   :  { %1819 = vmatpush1.bf16.msra.mxu0 %v5318_v4 }
 0x235   :  { %1820 = vmatprep.subr.bf16.mxu0 %v5323_v5 }
 0x238   :  { %1821 = vmatpush1.bf16.msra.mxu0 %v5321_v6 }
 0x23b   :  { %1823 = vmatmul.mubr.bf16.vlgmr.msra.gmra.mrb[4].mxu0 %v1363_v8 }
 0x30e   :  { %v1824_v13 = vpop.f32.mrb[4].mxu0 }
 0x30f   :  { %v1831_v14 = vmax.f32 %v1824_v13, 0.0  ;;  %v1826_v15 = vpop.f32.mrb[5].mxu0  ;;  %v5361_v13 = vld [vmem:[#allocation10 + $0x10] ss:$8 sps:$4 sm:$0xff]  }
 0x310   :  { %v1832_v16 = vmax.f32 %v1826_v15, 0.0  ;;  %v1828_v17 = vpop.f32.mrb[6].mxu0  ;;  %v5364_v15 = vld [vmem:[#allocation10 + $0x20] ss:$8 sps:$4 sm:$0xff]  }
 0x311   :  { %v1829_v18 = vpop.f32.mrb[7].mxu0  ;;  %v1833_v22 = vpack.c.bf16 %v1831_v14, %v1831_v14  ;;  %v5366_v14 = vld [vmem:[#allocation10 + $0x24] ss:$8 sps:$4 sm:$0xff]   ;;  %v5367_v17 = vld [vmem:[#allocation10 + $0x30] ss:$8 sps:$4 sm:$0xff]  }
 0x312   :  { %v1834_v19 = vpack.c.bf16 %v1832_v16, %v1832_v16  ;;  %v5369_v16 = vld [vmem:[#allocation10 + $0x34] ss:$8 sps:$4 sm:$0xff]   ;;  %v5372_v18 = vld [vmem:[#allocation10 + $0x44] ss:$8 sps:$4 sm:$0xff]  }
 0x314   :  { %1995 = vmatprep.mubr.bf16.mxu1 %v1834_v19  ;;  %v5370_v19 = vld [vmem:[#allocation10 + $0x40] ss:$8 sps:$4 sm:$0xff]  }
 0x315   :  { %1996 = vmatmul.mubr.bf16.vlgmr.msra.gmra.mrb[4].mxu1 %v1833_v22  ;;  %v5373_v22 = vld [vmem:[#allocation10 + $0x50] ss:$8 sps:$4 sm:$0xff]  }
 0x316   :  { %4888 = vmatpush3.bf16.msra.mxu1 %v5340_v21  ;;  %4903 = vmatprep.mubr.msk.bf16.mxu1 %vm5947_vm0, %v5946_v12  ;;  %v5375_v21 = vld [vmem:[#allocation10 + $0x54] ss:$8 sps:$4 sm:$0xff]  }
 0x317   :  { %4889 = vmatprep.subr.bf16.mxu1 %v5946_v12 }
 0x31a   :  { %4890 = vmatpush3.bf16.msra.mxu1 %v5341_v23  ;;  %v5378_v23 = vld [vmem:[#allocation10 + $0x64] ss:$8 sps:$4 sm:$0xff]  }
 0x31b   :  { %4891 = vmatprep.subr.bf16.mxu1 %v5946_v12 }
 0x31e   :  { %4892 = vmatpush3.bf16.msra.mxu1 %v5342_v24  ;;  %v5381_v24 = vld [vmem:[#allocation10 + $0x74] ss:$8 sps:$4 sm:$0xff]  }
 0x31f   :  { %4893 = vmatprep.subr.bf16.mxu1 %v5946_v12 }
 0x322   :  { %4894 = vmatpush3.bf16.msra.mxu1 %v5343_v25  ;;  %v5379_v25 = vld [vmem:[#allocation10 + $0x70] ss:$8 sps:$4 sm:$0xff]  }
 0x323   :  { %4895 = vmatprep.subr.bf16.mxu1 %v5946_v12 }
 0x326   :  { %4896 = vmatpush3.bf16.msra.mxu1 %v5344_v26  ;;  %v5382_v26 = vld [vmem:[#allocation11] ss:$16 sps:$4 sm:$0xff]  }
 0x327   :  { %4897 = vmatprep.subr.bf16.mxu1 %v5946_v12 }
 0x32a   :  { %4898 = vmatpush3.bf16.msra.mxu1 %v5345_v27  ;;  %v5384_v27 = vld [vmem:[#allocation11 + $0x4] ss:$16 sps:$4 sm:$0xff]  }
 0x32b   :  { %4899 = vmatprep.subr.bf16.mxu1 %v5946_v12  ;;  %2878 = vmatprep.subr.bf16.mxu0 %v5384_v27  ;;  %v5468_v27 = vld [vmem:[#allocation11 + $0x1c4] ss:$16 sps:$4 sm:$0xff]  }
 0x32c   :  { %2879 = vmatpush1.bf16.msra.mxu0 %v5382_v26  ;;  %v5463_v26 = vld [vmem:[#allocation11 + $0x1a8] ss:$16 sps:$4 sm:$0xff]  }
 0x32e   :  { %4900 = vmatpush3.bf16.msra.mxu1 %v5346_v28  ;;  %v5387_v28 = vld [vmem:[#allocation11 + $0xc] ss:$16 sps:$4 sm:$0xff]  }
 0x32f   :  { %4901 = vmatprep.subr.bf16.mxu1 %v5946_v12 }
 0x332   :  { %4902 = vmatpush3.bf16.msra.mxu1 %v5347_v29  ;;  %v5390_v29 = vld [vmem:[#allocation11 + $0x24] ss:$16 sps:$4 sm:$0xff]  }
 0x333   :  { %4907 = vmatprep.subr.bf16.mxu1 %v5946_v12  ;;  %2880 = vmatprep.subr.bf16.mxu0 %v5390_v29  ;;  %v5466_v29 = vld [vmem:[#allocation11 + $0x1c0] ss:$16 sps:$4 sm:$0xff]  }
 0x3e8   :  { %v4815_v30 = vpop.f32.mrb[4].mxu1 }
 0x3e9   :  { %v4816_v31 = vpop.f32.mrb[5].mxu1 }
 0x3ea   :  { %v4817_v32 = vadd.f32 %v4816_v31, %v4815_v30  ;;  %v4818_v33 = vpop.f32.mrb[6].mxu1  ;;  %v5388_v30 = vld [vmem:[#allocation11 + $0x20] ss:$16 sps:$4 sm:$0xff]   ;;  %v5396_v31 = vld [vmem:[#allocation11 + $0x44] ss:$16 sps:$4 sm:$0xff]  }
 0x3eb   :  { %v4819_v34 = vpop.f32.mrb[7].mxu1  ;;  %2881 = vmatpush1.bf16.msra.mxu0 %v5388_v30  ;;  %v5402_v33 = vld [vmem:[#allocation11 + $0x64] ss:$16 sps:$4 sm:$0xff]   ;;  %v5469_v30 = vld [vmem:[#allocation11 + $0x1c8] ss:$16 sps:$4 sm:$0xff]  }
 0x3ec   :  { %v2003_v35 = vmax.f32 %v4817_v32, 0.0  ;;  %v5394_v32 = vld [vmem:[#allocation11 + $0x40] ss:$16 sps:$4 sm:$0xff]   ;;  %2882 = vmatprep.subr.bf16.mxu0 %v5396_v31  ;;  %v5474_v31 = vld [vmem:[#allocation11 + $0x1e4] ss:$16 sps:$4 sm:$0xff]  }
 0x3ed   :  { %v5400_v34 = vld [vmem:[#allocation11 + $0x60] ss:$16 sps:$4 sm:$0xff]  }
 0x3ee   :  { %v2004_v37 = vpack.c.bf16 %v2003_v35, %v2003_v35  ;;  %v5408_v35 = vld [vmem:[#allocation11 + $0x84] ss:$16 sps:$4 sm:$0xff]  }
 0x3ef   :  { %2883 = vmatpush1.bf16.msra.mxu0 %v5394_v32  ;;  %v5477_v32 = vld [vmem:[#allocation11 + $0x1ec] ss:$16 sps:$4 sm:$0xff]  }
 0x3f0   :  { %4904 = vmatmul.mubr.bf16.vlgmr.msra.gmra.mrb[8].mxu1 %v2004_v37  ;;  %2884 = vmatprep.subr.bf16.mxu0 %v5402_v33  ;;  %v5414_v37 = vld [vmem:[#allocation11 + $0xa4] ss:$16 sps:$4 sm:$0xff]   ;;  %v5472_v33 = vld [vmem:[#allocation11 + $0x1e0] ss:$16 sps:$4 sm:$0xff]  }
 0x3f1   :  { %4908 = vmatpush3.bf16.msra.mxu1 %v5348_v36  ;;  %4915 = vmatprep.mubr.msk.bf16.mxu1 %vm5947_vm0, %v5946_v12  ;;  %v5406_v36 = vld [vmem:[#allocation11 + $0x80] ss:$16 sps:$4 sm:$0xff]  }
 0x3f2   :  { %4909 = vmatprep.subr.bf16.mxu1 %v5946_v12 }
 0x3f3   :  { %2885 = vmatpush1.bf16.msra.mxu0 %v5400_v34  ;;  %v5475_v34 = vld [vmem:[#allocation11 + $0x1e8] ss:$16 sps:$4 sm:$0xff]  }
 0x3f4   :  { %2886 = vmatprep.subr.bf16.mxu0 %v5408_v35  ;;  %v5480_v35 = vld [vmem:[#allocation13 + $0x4] ss:$20 sps:$4 sm:$0xff]  }
 0x3f5   :  { %4910 = vmatpush3.bf16.msra.mxu1 %v5349_v38  ;;  %v5412_v38 = vld [vmem:[#allocation11 + $0xa0] ss:$16 sps:$4 sm:$0xff]  }
 0x3f6   :  { %4911 = vmatprep.subr.bf16.mxu1 %v5946_v12 }
 0x3f7   :  { %2887 = vmatpush1.bf16.msra.mxu0 %v5406_v36  ;;  %v5483_v36 = vld [vmem:[#allocation13 + $0xc] ss:$20 sps:$4 sm:$0xff]  }
 0x3f8   :  { %2888 = vmatprep.subr.bf16.mxu0 %v5414_v37 }
 0x3f9   :  { %4912 = vmatpush3.bf16.msra.mxu1 %v5350_v39  ;;  %v5420_v39 = vld [vmem:[#allocation11 + $0xc4] ss:$16 sps:$4 sm:$0xff]  }
 0x3fa   :  { %4913 = vmatprep.subr.bf16.mxu1 %v5946_v12 }
 0x3fb   :  { %2889 = vmatpush1.bf16.msra.mxu0 %v5412_v38 }
 0x3fc   :  { %2890 = vmatprep.subr.bf16.mxu0 %v5420_v39 }
 0x3fd   :  { %4914 = vmatpush3.bf16.msra.mxu1 %v5351_v40  ;;  %v5418_v40 = vld [vmem:[#allocation11 + $0xc0] ss:$16 sps:$4 sm:$0xff]  }
 0x3fe   :  { %4919 = vmatprep.subr.bf16.mxu1 %v5946_v12 }
 0x3ff   :  { %2891 = vmatpush1.bf16.msra.mxu0 %v5418_v40 }
 0x4c3   :  { %v2103_v41 = vpop.f32.mrb[8].mxu1 }
 0x4c4   :  { %v2109_v42 = vmax.f32 %v2103_v41, 0.0  ;;  %v4905_v43 = vpop.f32.mrb[9].mxu1  ;;  %v5426_v41 = vld [vmem:[#allocation11 + $0xe4] ss:$16 sps:$4 sm:$0xff]  }
 0x4c5   :  { %v2106_v44 = vpop.f32.mrb[10].mxu1  ;;  %2892 = vmatprep.subr.bf16.mxu0 %v5426_v41  ;;  %v5432_v43 = vld [vmem:[#allocation11 + $0x104] ss:$16 sps:$4 sm:$0xff]  }
 0x4c6   :  { %v2110_v45 = vpack.c.bf16 %v2109_v42, %v2109_v42  ;;  %v4906_v46 = vpop.f32.mrb[11].mxu1  ;;  %v5424_v42 = vld [vmem:[#allocation11 + $0xe0] ss:$16 sps:$4 sm:$0xff]  }
 0x4c7   :  { %2893 = vmatpush1.bf16.msra.mxu0 %v5424_v42  ;;  %v5430_v44 = vld [vmem:[#allocation11 + $0x100] ss:$16 sps:$4 sm:$0xff]  }
 0x4c8   :  { %4916 = vmatmul.mubr.msk.bf16.vlgmr.msra.gmra.mrb[12].mxu1 %vm2143_vm1, %v2110_v45  ;;  %2894 = vmatprep.subr.bf16.mxu0 %v5432_v43  ;;  %v5438_v45 = vld [vmem:[#allocation11 + $0x124] ss:$16 sps:$4 sm:$0xff]   ;;  %v5436_v46 = vld [vmem:[#allocation11 + $0x120] ss:$16 sps:$4 sm:$0xff]  }
 0x4c9   :  { %4923 = vmatprep.mubr.msk.bf16.mxu1 %vm5947_vm0, %v5946_v12  ;;  %4920 = vmatpush3.bf16.msra.mxu1 %v5352_v47  ;;  %v5444_v47 = vld [vmem:[#allocation11 + $0x144] ss:$16 sps:$4 sm:$0xff]  }
 0x4ca   :  { %4921 = vmatprep.subr.bf16.mxu1 %v5946_v12 }
 0x4cb   :  { %2895 = vmatpush1.bf16.msra.mxu0 %v5430_v44 }
 0x4cc   :  { %2896 = vmatprep.subr.bf16.mxu0 %v5438_v45 }
 0x4cd   :  { %4922 = vmatpush3.bf16.msra.mxu1 %v5353_v54 }
 0x4ce   :  { %4927 = vmatprep.subr.bf16.mxu1 %v5946_v12 }
 0x4cf   :  { %2897 = vmatpush1.bf16.msra.mxu0 %v5436_v46 }
 0x4d0   :  { %2898 = vmatprep.subr.bf16.mxu0 %v5444_v47 }
 0x59b   :  { %v2181_v48 = vpop.f32.mrb[12].mxu1 }
 0x59c   :  { %v2187_v49 = vmul.f32 0.5, %v2181_v48  ;;  %4257 = vst.msk [vmem:[#allocation15] sm:$0xff] %vm2143_vm1, %v2181_v48  ;;  %v4917_v50 = vpop.f32.mrb[13].mxu1 }
 0x59d   :  { %v2184_v51 = vpop.f32.mrb[14].mxu1 }
 0x59e   :  { %v2188_v52 = vmul.f32 1.442695, %v2187_v49  ;;  %v4918_v53 = vpop.f32.mrb[15].mxu1 }
 0x5a0   :  { %5702 = vpow2.f32 %v2188_v52 }
 0x5aa   :  { %v5703_v55 = vpop.eup %5702 }
 0x5ab   :  { %2192 = vrot.lane.b32.xlu0 %v5703_v55, %s5948_s5 }
 0x61d   :  { %v2193_v57 = vpop.permute.xlu0 %2192 }
 0x61e   :  { %v2195_v58 = vmul.f32 %v2193_v57, %v2190_v56  ;;  %v5385_v57 = vld [vmem:[#allocation11 + $0x8] ss:$16 sps:$4 sm:$0xff]  }
 0x620   :  { %v2196_v59 = vadd.f32 %v2195_v58, %v2181_v48  ;;  %v5442_v48 = vld [vmem:[#allocation11 + $0x140] ss:$16 sps:$4 sm:$0xff]  }
 0x621   :  { %2899 = vmatpush1.bf16.msra.mxu0 %v5442_v48 }
 0x622   :  { %v2197_v60 = vpack.c.bf16 %v2196_v59, %v2196_v59  ;;  %v5393_v59 = vld [vmem:[#allocation11 + $0x2c] ss:$16 sps:$4 sm:$0xff]  }
 0x624   :  { %4924 = vmatmul.mubr.msk.bf16.vlgmr.msra.gmra.mrb[16].mxu1 %vm2214_vm2, %v2197_v60  ;;  %v5391_v60 = vld [vmem:[#allocation11 + $0x28] ss:$16 sps:$4 sm:$0xff]  }
 0x625   :  { %4935 = vmatprep.mubr.msk.bf16.mxu1 %vm5947_vm0, %v5946_v12  ;;  %4928 = vmatpush3.bf16.msra.mxu1 %v5354_v61  ;;  %v5399_v61 = vld [vmem:[#allocation11 + $0x4c] ss:$16 sps:$4 sm:$0xff]  }
 0x626   :  { %4929 = vmatprep.subr.bf16.mxu1 %v5946_v12 }
 0x629   :  { %4930 = vmatpush3.bf16.msra.mxu1 %v5355_v62  ;;  %v5397_v62 = vld [vmem:[#allocation11 + $0x48] ss:$16 sps:$4 sm:$0xff]  }
 0x62a   :  { %4931 = vmatprep.subr.bf16.mxu1 %v5946_v12 }
 0x62d   :  { %4932 = vmatpush3.bf16.msra.mxu1 %v5356_v63  ;;  %v5405_v63 = vld [vmem:[#allocation11 + $0x6c] ss:$16 sps:$4 sm:$0xff]  }
 0x62e   :  { %4933 = vmatprep.subr.bf16.mxu1 %v5946_v12  ;;  %v5363_v12 = vld [vmem:[#allocation10 + $0x14] ss:$8 sps:$4 sm:$0xff]  }
 0x631   :  { %4934 = vmatpush3.bf16.msra.mxu1 %v5357_v0  ;;  %v5403_v0 = vld [vmem:[#allocation11 + $0x68] ss:$16 sps:$4 sm:$0xff]  }
 0x632   :  { %2441 = vmatprep.subr.bf16.mxu1 %v5360_v1  ;;  %v5411_v1 = vld [vmem:[#allocation11 + $0x8c] ss:$16 sps:$4 sm:$0xff]  }
 0x6f7   :  { %v2252_v2 = vpop.f32.mrb[16].mxu1 }
 0x6f8   :  { %v2259_v3 = vmul.f32 1.442695, %v2252_v2  ;;  %v4925_v4 = vpop.f32.mrb[17].mxu1  ;;  %vm2258_vm3 = vcmp.gt.f32.partialorder %v2252_v2, 0.0 }
 0x6f9   :  { %v2255_v5 = vpop.f32.mrb[18].mxu1  ;;  %v5415_v4 = vld [vmem:[#allocation11 + $0xa8] ss:$16 sps:$4 sm:$0xff]  }
 0x6fa   :  { %5704 = vpow2.f32 %v2259_v3  ;;  %v4926_v6 = vpop.f32.mrb[19].mxu1  ;;  %v5417_v3 = vld [vmem:[#allocation11 + $0xac] ss:$16 sps:$4 sm:$0xff]  }
 0x6fb   :  { %v5423_v5 = vld [vmem:[#allocation11 + $0xcc] ss:$16 sps:$4 sm:$0xff]   ;;  %v5421_v6 = vld [vmem:[#allocation11 + $0xc8] ss:$16 sps:$4 sm:$0xff]  }
 0x704   :  { %v5705_v7 = vpop.eup %5704 }
 0x705   :  { %v4546_v8 = vadd.f32 -1.0, %v5705_v7  ;;  %v5429_v7 = vld [vmem:[#allocation11 + $0xec] ss:$16 sps:$4 sm:$0xff]  }
 0x707   :  { %v2262_v9 = vsel %vm2258_vm3, %v2252_v2, %v4546_v8  ;;  %v5409_v2 = vld [vmem:[#allocation11 + $0x88] ss:$16 sps:$4 sm:$0xff]  }
 0x708   :  { %v2263_v11 = vpack.c.bf16 %v2262_v9, %v2262_v9  ;;  %v5427_v8 = vld [vmem:[#allocation11 + $0xe8] ss:$16 sps:$4 sm:$0xff]   ;;  %v5435_v9 = vld [vmem:[#allocation11 + $0x10c] ss:$16 sps:$4 sm:$0xff]  }
 0x70a   :  { %4936 = vmatmul.mubr.msk.bf16.vlgmr.msra.gmra.mrb[20].mxu1 %vm2143_vm1, %v2263_v11  ;;  %v5441_v11 = vld [vmem:[#allocation11 + $0x12c] ss:$16 sps:$4 sm:$0xff]  }
 0x70b   :  { %2442 = vmatpush1.bf16.msra.mxu1 %v5358_v10  ;;  %2473 = vmatprep.mubr.bf16.mxu1 %v5945_v20  ;;  %v5376_v20 = vld [vmem:[#allocation10 + $0x60] ss:$8 sps:$4 sm:$0xff]  }
 0x70c   :  { %2443 = vmatprep.subr.bf16.mxu1 %v5363_v12  ;;  %v5433_v10 = vld [vmem:[#allocation11 + $0x108] ss:$16 sps:$4 sm:$0xff]  }
 0x70d   :  { %v5439_v12 = vld [vmem:[#allocation11 + $0x128] ss:$16 sps:$4 sm:$0xff]  }
 0x70f   :  { %2444 = vmatpush1.bf16.msra.mxu1 %v5361_v13  ;;  %v5447_v13 = vld [vmem:[#allocation11 + $0x14c] ss:$16 sps:$4 sm:$0xff]  }
 0x710   :  { %2445 = vmatprep.subr.bf16.mxu1 %v5366_v14  ;;  %v5445_v14 = vld [vmem:[#allocation11 + $0x148] ss:$16 sps:$4 sm:$0xff]  }
 0x713   :  { %2446 = vmatpush1.bf16.msra.mxu1 %v5364_v15  ;;  %v5450_v15 = vld [vmem:[#allocation11 + $0x164] ss:$16 sps:$4 sm:$0xff]  }
 0x714   :  { %2447 = vmatprep.subr.bf16.mxu1 %v5369_v16  ;;  %v5453_v16 = vld [vmem:[#allocation11 + $0x16c] ss:$16 sps:$4 sm:$0xff]   ;;  %2900 = vmatprep.subr.bf16.mxu0 %v5450_v15 }
 0x715   :  { %v5520_v15 = vld [vmem:[#allocation13 + $0x118] ss:$20 sps:$4 sm:$0xff]  }
 0x717   :  { %2448 = vmatpush1.bf16.msra.mxu1 %v5367_v17  ;;  %v5448_v17 = vld [vmem:[#allocation11 + $0x160] ss:$16 sps:$4 sm:$0xff]  }
 0x718   :  { %2449 = vmatprep.subr.bf16.mxu1 %v5372_v18  ;;  %v5451_v18 = vld [vmem:[#allocation11 + $0x168] ss:$16 sps:$4 sm:$0xff]   ;;  %2901 = vmatpush1.bf16.msra.mxu0 %v5448_v17 }
 0x719   :  { %v5528_v17 = vld [vmem:[#allocation13 + $0x144] ss:$20 sps:$4 sm:$0xff]  }
 0x71b   :  { %2450 = vmatpush1.bf16.msra.mxu1 %v5370_v19  ;;  %v5456_v19 = vld [vmem:[#allocation11 + $0x184] ss:$16 sps:$4 sm:$0xff]  }
 0x71c   :  { %2451 = vmatprep.subr.bf16.mxu1 %v5375_v21  ;;  %v5459_v21 = vld [vmem:[#allocation11 + $0x18c] ss:$16 sps:$4 sm:$0xff]   ;;  %2902 = vmatprep.subr.bf16.mxu0 %v5456_v19  ;;  %v5526_v19 = vld [vmem:[#allocation13 + $0x140] ss:$20 sps:$4 sm:$0xff]  }
 0x71f   :  { %2452 = vmatpush1.bf16.msra.mxu1 %v5373_v22  ;;  %v5454_v22 = vld [vmem:[#allocation11 + $0x180] ss:$16 sps:$4 sm:$0xff]  }
 0x720   :  { %2453 = vmatprep.subr.bf16.mxu1 %v5378_v23  ;;  %v5457_v23 = vld [vmem:[#allocation11 + $0x188] ss:$16 sps:$4 sm:$0xff]   ;;  %2903 = vmatpush1.bf16.msra.mxu0 %v5454_v22  ;;  %v5534_v22 = vld [vmem:[#allocation13 + $0x16c] ss:$20 sps:$4 sm:$0xff]  }
 0x723   :  { %2454 = vmatpush1.bf16.msra.mxu1 %v5376_v20  ;;  %v5462_v20 = vld [vmem:[#allocation11 + $0x1a4] ss:$16 sps:$4 sm:$0xff]  }
 0x724   :  { %2455 = vmatprep.subr.bf16.mxu1 %v5381_v24  ;;  %v5465_v24 = vld [vmem:[#allocation11 + $0x1ac] ss:$16 sps:$4 sm:$0xff]   ;;  %2904 = vmatprep.subr.bf16.mxu0 %v5462_v20 }
 0x725   :  { %v5532_v20 = vld [vmem:[#allocation13 + $0x168] ss:$20 sps:$4 sm:$0xff]  }
 0x727   :  { %2456 = vmatpush1.bf16.msra.mxu1 %v5379_v25  ;;  %v5460_v25 = vld [vmem:[#allocation11 + $0x1a0] ss:$16 sps:$4 sm:$0xff]  }
 0x728   :  { %2919 = vmatprep.subr.bf16.mxu1 %v5387_v28  ;;  %2905 = vmatpush1.bf16.msra.mxu0 %v5460_v25  ;;  %v5471_v28 = vld [vmem:[#allocation11 + $0x1cc] ss:$16 sps:$4 sm:$0xff]   ;;  %v5540_v25 = vld [vmem:[#allocation13 + $0x194] ss:$20 sps:$4 sm:$0xff]  }
 0x729   :  { %2906 = vmatprep.subr.bf16.mxu0 %v5468_v27  ;;  %v5538_v27 = vld [vmem:[#allocation13 + $0x190] ss:$20 sps:$4 sm:$0xff]  }
 0x72c   :  { %2907 = vmatpush1.bf16.msra.mxu0 %v5466_v29  ;;  %v5546_v29 = vld [vmem:[#allocation13 + $0x1bc] ss:$20 sps:$4 sm:$0xff]  }
 0x72d   :  { %2908 = vmatprep.subr.bf16.mxu0 %v5474_v31  ;;  %v5544_v31 = vld [vmem:[#allocation13 + $0x1b8] ss:$20 sps:$4 sm:$0xff]  }
 0x730   :  { %2909 = vmatpush1.bf16.msra.mxu0 %v5472_v33  ;;  %v5552_v33 = vld [vmem:[#allocation13 + $0x1e4] ss:$20 sps:$4 sm:$0xff]  }
 0x731   :  { %4008 = vmatprep.subr.bf16.mxu0 %v5480_v35  ;;  %v5550_v35 = vld [vmem:[#allocation13 + $0x1e0] ss:$20 sps:$4 sm:$0xff]  }
 0x7dd   :  { %v2333_v49 = vpop.f32.mrb[20].mxu1 }
 0x7de   :  { %v2340_v50 = vmul.f32 1.442695, %v2333_v49  ;;  %v4937_v51 = vpop.f32.mrb[21].mxu1  ;;  %vm2339_vm4 = vcmp.gt.f32.partialorder %v2333_v49, 0.0 }
 0x7df   :  { %v2336_v52 = vpop.f32.mrb[22].mxu1  ;;  %v5481_v51 = vld [vmem:[#allocation13 + $0x8] ss:$20 sps:$4 sm:$0xff]  }
 0x7e0   :  { %5706 = vpow2.f32 %v2340_v50  ;;  %v4938_v53 = vpop.f32.mrb[23].mxu1  ;;  %v5478_v50 = vld [vmem:[#allocation13] ss:$20 sps:$4 sm:$0xff]  }
 0x7e1   :  { %v5486_v53 = vld [vmem:[#allocation13 + $0x2c] ss:$20 sps:$4 sm:$0xff]  }
 0x7ea   :  { %v5707_v54 = vpop.eup %5706 }
 0x7eb   :  { %v4552_v55 = vadd.f32 -1.0, %v5707_v54  ;;  %v5489_v54 = vld [vmem:[#allocation13 + $0x34] ss:$20 sps:$4 sm:$0xff]  }
 0x7ed   :  { %v2343_v56 = vsel %vm2339_vm4, %v2333_v49, %v4552_v55  ;;  %v5484_v55 = vld [vmem:[#allocation13 + $0x28] ss:$20 sps:$4 sm:$0xff]  }
 0x7ee   :  { %v2344_v58 = vpack.c.bf16 %v2343_v56, %v2343_v56  ;;  %v5487_v56 = vld [vmem:[#allocation13 + $0x30] ss:$20 sps:$4 sm:$0xff]  }
 0x7f0   :  { %2474 = vmatmul.mubr.bf16.vlgmr.msra.gmra.mrb[24].mxu1 %v2344_v58  ;;  %v5495_v58 = vld [vmem:[#allocation13 + $0x5c] ss:$20 sps:$4 sm:$0xff]  }
 0x7f1   :  { %2920 = vmatpush1.bf16.msra.mxu1 %v5385_v57  ;;  %v5492_v57 = vld [vmem:[#allocation13 + $0x54] ss:$20 sps:$4 sm:$0xff]  }
 0x7f2   :  { %2921 = vmatprep.subr.bf16.mxu1 %v5393_v59  ;;  %v5490_v59 = vld [vmem:[#allocation13 + $0x50] ss:$20 sps:$4 sm:$0xff]  }
 0x7f5   :  { %2922 = vmatpush1.bf16.msra.mxu1 %v5391_v60  ;;  %v5493_v60 = vld [vmem:[#allocation13 + $0x58] ss:$20 sps:$4 sm:$0xff]  }
 0x7f6   :  { %2923 = vmatprep.subr.bf16.mxu1 %v5399_v61  ;;  %v5498_v61 = vld [vmem:[#allocation13 + $0x7c] ss:$20 sps:$4 sm:$0xff]  }
 0x7f9   :  { %2924 = vmatpush1.bf16.msra.mxu1 %v5397_v62  ;;  %v5501_v62 = vld [vmem:[#allocation13 + $0x84] ss:$20 sps:$4 sm:$0xff]  }
 0x7fa   :  { %2925 = vmatprep.subr.bf16.mxu1 %v5405_v63  ;;  %v5496_v63 = vld [vmem:[#allocation13 + $0x78] ss:$20 sps:$4 sm:$0xff]  }
 0x7fd   :  { %2926 = vmatpush1.bf16.msra.mxu1 %v5403_v0  ;;  %v5499_v0 = vld [vmem:[#allocation13 + $0x80] ss:$20 sps:$4 sm:$0xff]  }
 0x7fe   :  { %2927 = vmatprep.subr.bf16.mxu1 %v5411_v1  ;;  %v5504_v1 = vld [vmem:[#allocation13 + $0xa4] ss:$20 sps:$4 sm:$0xff]  }
 0x801   :  { %2928 = vmatpush1.bf16.msra.mxu1 %v5409_v2  ;;  %v5507_v2 = vld [vmem:[#allocation13 + $0xac] ss:$20 sps:$4 sm:$0xff]  }
 0x802   :  { %2929 = vmatprep.subr.bf16.mxu1 %v5417_v3  ;;  %v5502_v3 = vld [vmem:[#allocation13 + $0xa0] ss:$20 sps:$4 sm:$0xff]  }
 0x805   :  { %2930 = vmatpush1.bf16.msra.mxu1 %v5415_v4  ;;  %v5505_v4 = vld [vmem:[#allocation13 + $0xa8] ss:$20 sps:$4 sm:$0xff]  }
 0x806   :  { %2931 = vmatprep.subr.bf16.mxu1 %v5423_v5  ;;  %v5510_v5 = vld [vmem:[#allocation13 + $0xcc] ss:$20 sps:$4 sm:$0xff]  }
 0x809   :  { %2932 = vmatpush1.bf16.msra.mxu1 %v5421_v6  ;;  %v5513_v6 = vld [vmem:[#allocation13 + $0xd4] ss:$20 sps:$4 sm:$0xff]  }
 0x80a   :  { %2933 = vmatprep.subr.bf16.mxu1 %v5429_v7  ;;  %v5508_v7 = vld [vmem:[#allocation13 + $0xc8] ss:$20 sps:$4 sm:$0xff]  }
 0x80d   :  { %2934 = vmatpush1.bf16.msra.mxu1 %v5427_v8  ;;  %v5511_v8 = vld [vmem:[#allocation13 + $0xd0] ss:$20 sps:$4 sm:$0xff]  }
 0x80e   :  { %2935 = vmatprep.subr.bf16.mxu1 %v5435_v9  ;;  %v5516_v9 = vld [vmem:[#allocation13 + $0xf4] ss:$20 sps:$4 sm:$0xff]  }
 0x811   :  { %2936 = vmatpush1.bf16.msra.mxu1 %v5433_v10  ;;  %v5519_v10 = vld [vmem:[#allocation13 + $0xfc] ss:$20 sps:$4 sm:$0xff]  }
 0x812   :  { %2937 = vmatprep.subr.bf16.mxu1 %v5441_v11  ;;  %v5514_v11 = vld [vmem:[#allocation13 + $0xf0] ss:$20 sps:$4 sm:$0xff]  }
 0x815   :  { %2938 = vmatpush1.bf16.msra.mxu1 %v5439_v12  ;;  %v5517_v12 = vld [vmem:[#allocation13 + $0xf8] ss:$20 sps:$4 sm:$0xff]  }
 0x816   :  { %2939 = vmatprep.subr.bf16.mxu1 %v5447_v13  ;;  %v5522_v13 = vld [vmem:[#allocation13 + $0x11c] ss:$20 sps:$4 sm:$0xff]  }
 0x819   :  { %2940 = vmatpush1.bf16.msra.mxu1 %v5445_v14  ;;  %v5525_v14 = vld [vmem:[#allocation13 + $0x124] ss:$20 sps:$4 sm:$0xff]  }
 0x81a   :  { %2941 = vmatprep.subr.bf16.mxu1 %v5453_v16  ;;  %v5523_v16 = vld [vmem:[#allocation13 + $0x120] ss:$20 sps:$4 sm:$0xff]  }
 0x81d   :  { %2942 = vmatpush1.bf16.msra.mxu1 %v5451_v18  ;;  %v5531_v18 = vld [vmem:[#allocation13 + $0x14c] ss:$20 sps:$4 sm:$0xff]  }
 0x81e   :  { %2943 = vmatprep.subr.bf16.mxu1 %v5459_v21  ;;  %v5529_v21 = vld [vmem:[#allocation13 + $0x148] ss:$20 sps:$4 sm:$0xff]  }
 0x821   :  { %2944 = vmatpush1.bf16.msra.mxu1 %v5457_v23  ;;  %v5537_v23 = vld [vmem:[#allocation13 + $0x174] ss:$20 sps:$4 sm:$0xff]  }
 0x822   :  { %2945 = vmatprep.subr.bf16.mxu1 %v5465_v24  ;;  %v5535_v24 = vld [vmem:[#allocation13 + $0x170] ss:$20 sps:$4 sm:$0xff]  }
 0x825   :  { %2946 = vmatpush1.bf16.msra.mxu1 %v5463_v26  ;;  %v5543_v26 = vld [vmem:[#allocation13 + $0x19c] ss:$20 sps:$4 sm:$0xff]  }
 0x826   :  { %2947 = vmatprep.subr.bf16.mxu1 %v5471_v28  ;;  %v5541_v28 = vld [vmem:[#allocation13 + $0x198] ss:$20 sps:$4 sm:$0xff]  }
 0x829   :  { %2948 = vmatpush1.bf16.msra.mxu1 %v5469_v30  ;;  %v5549_v30 = vld [vmem:[#allocation13 + $0x1c4] ss:$20 sps:$4 sm:$0xff]  }
 0x82a   :  { %2949 = vmatprep.subr.bf16.mxu1 %v5477_v32  ;;  %v5547_v32 = vld [vmem:[#allocation13 + $0x1c0] ss:$20 sps:$4 sm:$0xff]  }
 0x82d   :  { %2950 = vmatpush1.bf16.msra.mxu1 %v5475_v34  ;;  %v5555_v34 = vld [vmem:[#allocation13 + $0x1ec] ss:$20 sps:$4 sm:$0xff]  }
 0x82e   :  { %4090 = vmatprep.subr.bf16.mxu1 %v5483_v36  ;;  %v5553_v36 = vld [vmem:[#allocation13 + $0x1e8] ss:$20 sps:$4 sm:$0xff]  }
 0x8c3   :  { %v2475_v37 = vpop.f32.mrb[24].mxu1 }
 0x8c4   :  { %v2484_v38 = vmul.f32 1.442695, %v2475_v37  ;;  %v2477_v39 = vpop.f32.mrb[25].mxu1  ;;  %vm2482_vm5 = vcmp.gt.f32.partialorder %v2475_v37, 0.0 }
 0x8c5   :  { %v2486_v40 = vmul.f32 1.442695, %v2477_v39  ;;  %v2479_v41 = vpop.f32.mrb[26].mxu1  ;;  %vm2483_vm6 = vcmp.gt.f32.partialorder %v2477_v39, 0.0 }
 0x8c6   :  { %5708 = vpow2.f32 %v2484_v38  ;;  %v2480_v42 = vpop.f32.mrb[27].mxu1  ;;  %v5561_v38 = vld [vmem:[#allocation13 + $0x214] ss:$20 sps:$4 sm:$0xff]  }
 0x8c7   :  { %5710 = vpow2.f32 %v2486_v40  ;;  %v5559_v40 = vld [vmem:[#allocation13 + $0x210] ss:$20 sps:$4 sm:$0xff]   ;;  %v5564_v41 = vld [vmem:[#allocation13 + $0x234] ss:$20 sps:$4 sm:$0xff]  }
 0x8c8   :  { %v5567_v42 = vld [vmem:[#allocation13 + $0x23c] ss:$20 sps:$4 sm:$0xff]  }
 0x8d0   :  { %v5709_v43 = vpop.eup %5708 }
 0x8d1   :  { %v5711_v44 = vpop.eup %5710  ;;  %v4569_v45 = vadd.f32 -1.0, %v5709_v43  ;;  %v5562_v43 = vld [vmem:[#allocation13 + $0x230] ss:$20 sps:$4 sm:$0xff]  }
 0x8d2   :  { %v4570_v46 = vadd.f32 -1.0, %v5711_v44  ;;  %v5565_v44 = vld [vmem:[#allocation13 + $0x238] ss:$20 sps:$4 sm:$0xff]  }
 0x8d3   :  { %v2490_v47 = vsel %vm2482_vm5, %v2475_v37, %v4569_v45  ;;  %v5558_v37 = vld [vmem:[#allocation13 + $0x20c] ss:$20 sps:$4 sm:$0xff]   ;;  %v5570_v45 = vld [vmem:[#allocation13 + $0x25c] ss:$20 sps:$4 sm:$0xff]  }
 0x8d4   :  { %v2491_v48 = vsel %vm2483_vm6, %v2477_v39, %v4570_v46  ;;  %v2492_v52 = vpack.c.bf16 %v2490_v47, %v2490_v47  ;;  %v5556_v39 = vld [vmem:[#allocation13 + $0x208] ss:$20 sps:$4 sm:$0xff]   ;;  %v5573_v46 = vld [vmem:[#allocation13 + $0x264] ss:$20 sps:$4 sm:$0xff]  }
 0x8d5   :  { %v2493_v49 = vpack.c.bf16 %v2491_v48, %v2491_v48  ;;  %v5568_v47 = vld [vmem:[#allocation13 + $0x258] ss:$20 sps:$4 sm:$0xff]   ;;  %v5571_v48 = vld [vmem:[#allocation13 + $0x260] ss:$20 sps:$4 sm:$0xff]  }
 0x8d7   :  { %2910 = vmatprep.mubr.bf16.mxu0 %v2493_v49  ;;  %2951 = vmatprep.mubr.bf16.mxu1 %v2493_v49  ;;  %v5576_v49 = vld [vmem:[#allocation13 + $0x284] ss:$20 sps:$4 sm:$0xff]  }
 0x8d8   :  { %2911 = vmatmul.mubr.bf16.vlgmr.msra.gmra.mrb[8].mxu0 %v2492_v52  ;;  %2952 = vmatmul.mubr.bf16.vlgmr.msra.gmra.mrb[28].mxu1 %v2492_v52 }
 0x8d9   :  { %4009 = vmatpush1.bf16.msra.mxu0 %v5478_v50  ;;  %4091 = vmatpush1.bf16.msra.mxu1 %v5481_v51  ;;  %v5579_v50 = vld [vmem:[#allocation13 + $0x28c] ss:$20 sps:$4 sm:$0xff]  }
 0x8da   :  { %4010 = vmatprep.subr.bf16.mxu0 %v5486_v53  ;;  %4092 = vmatprep.subr.bf16.mxu1 %v5489_v54 }
 0x8dd   :  { %4011 = vmatpush1.bf16.msra.mxu0 %v5484_v55  ;;  %4093 = vmatpush1.bf16.msra.mxu1 %v5487_v56 }
 0x8de   :  { %4012 = vmatprep.subr.bf16.mxu0 %v5492_v57  ;;  %4094 = vmatprep.subr.bf16.mxu1 %v5495_v58 }
 0x8e1   :  { %4013 = vmatpush1.bf16.msra.mxu0 %v5490_v59  ;;  %4095 = vmatpush1.bf16.msra.mxu1 %v5493_v60 }
 0x8e2   :  { %4014 = vmatprep.subr.bf16.mxu0 %v5498_v61  ;;  %4096 = vmatprep.subr.bf16.mxu1 %v5501_v62 }
 0x8e5   :  { %4015 = vmatpush1.bf16.msra.mxu0 %v5496_v63  ;;  %4097 = vmatpush1.bf16.msra.mxu1 %v5499_v0 }
 0x8e6   :  { %4016 = vmatprep.subr.bf16.mxu0 %v5504_v1  ;;  %4098 = vmatprep.subr.bf16.mxu1 %v5507_v2 }
 0x8e9   :  { %4017 = vmatpush1.bf16.msra.mxu0 %v5502_v3  ;;  %4099 = vmatpush1.bf16.msra.mxu1 %v5505_v4 }
 0x8ea   :  { %4018 = vmatprep.subr.bf16.mxu0 %v5510_v5  ;;  %4100 = vmatprep.subr.bf16.mxu1 %v5513_v6 }
 0x8ed   :  { %4019 = vmatpush1.bf16.msra.mxu0 %v5508_v7  ;;  %4101 = vmatpush1.bf16.msra.mxu1 %v5511_v8  ;;  %v5574_v8 = vld [vmem:[#allocation13 + $0x280] ss:$20 sps:$4 sm:$0xff]  }
 0x8ee   :  { %4020 = vmatprep.subr.bf16.mxu0 %v5516_v9  ;;  %4102 = vmatprep.subr.bf16.mxu1 %v5519_v10  ;;  %v5577_v9 = vld [vmem:[#allocation13 + $0x288] ss:$20 sps:$4 sm:$0xff]  }
 0x8f1   :  { %4021 = vmatpush1.bf16.msra.mxu0 %v5514_v11  ;;  %4103 = vmatpush1.bf16.msra.mxu1 %v5517_v12  ;;  %v5582_v11 = vld [vmem:[#allocation13 + $0x2ac] ss:$20 sps:$4 sm:$0xff]   ;;  %v5585_v12 = vld [vmem:[#allocation13 + $0x2b4] ss:$20 sps:$4 sm:$0xff]  }
 0x8f2   :  { %4022 = vmatprep.subr.bf16.mxu0 %v5522_v13  ;;  %4104 = vmatprep.subr.bf16.mxu1 %v5525_v14  ;;  %v5580_v14 = vld [vmem:[#allocation13 + $0x2a8] ss:$20 sps:$4 sm:$0xff]  }
 0x8f5   :  { %4023 = vmatpush1.bf16.msra.mxu0 %v5520_v15  ;;  %4105 = vmatpush1.bf16.msra.mxu1 %v5523_v16  ;;  %v5583_v15 = vld [vmem:[#allocation13 + $0x2b0] ss:$20 sps:$4 sm:$0xff]   ;;  %v5588_v16 = vld [vmem:[#allocation13 + $0x2d4] ss:$20 sps:$4 sm:$0xff]  }
 0x8f6   :  { %4024 = vmatprep.subr.bf16.mxu0 %v5528_v17  ;;  %4106 = vmatprep.subr.bf16.mxu1 %v5531_v18  ;;  %v5591_v17 = vld [vmem:[#allocation13 + $0x2dc] ss:$20 sps:$4 sm:$0xff]  }
 0x8f7   :  { %v5586_v18 = vld [vmem:[#allocation13 + $0x2d0] ss:$20 sps:$4 sm:$0xff]  }
 0x8f9   :  { %4025 = vmatpush1.bf16.msra.mxu0 %v5526_v19  ;;  %4107 = vmatpush1.bf16.msra.mxu1 %v5529_v21  ;;  %v5589_v19 = vld [vmem:[#allocation13 + $0x2d8] ss:$20 sps:$4 sm:$0xff]   ;;  %v5594_v21 = vld [vmem:[#allocation13 + $0x2fc] ss:$20 sps:$4 sm:$0xff]  }
 0x8fa   :  { %4026 = vmatprep.subr.bf16.mxu0 %v5534_v22  ;;  %4108 = vmatprep.subr.bf16.mxu1 %v5537_v23  ;;  %v5597_v22 = vld [vmem:[#allocation13 + $0x304] ss:$20 sps:$4 sm:$0xff]  }
 0x8fb   :  { %v5592_v23 = vld [vmem:[#allocation13 + $0x2f8] ss:$20 sps:$4 sm:$0xff]  }
 0x8fd   :  { %4027 = vmatpush1.bf16.msra.mxu0 %v5532_v20  ;;  %4109 = vmatpush1.bf16.msra.mxu1 %v5535_v24  ;;  %v5595_v20 = vld [vmem:[#allocation13 + $0x300] ss:$20 sps:$4 sm:$0xff]   ;;  %v5600_v24 = vld [vmem:[#allocation13 + $0x324] ss:$20 sps:$4 sm:$0xff]  }
 0x8fe   :  { %4028 = vmatprep.subr.bf16.mxu0 %v5540_v25  ;;  %4110 = vmatprep.subr.bf16.mxu1 %v5543_v26  ;;  %v5603_v25 = vld [vmem:[#allocation13 + $0x32c] ss:$20 sps:$4 sm:$0xff]  }
 0x8ff   :  { %v5598_v26 = vld [vmem:[#allocation13 + $0x320] ss:$20 sps:$4 sm:$0xff]  }
 0x901   :  { %4029 = vmatpush1.bf16.msra.mxu0 %v5538_v27  ;;  %4111 = vmatpush1.bf16.msra.mxu1 %v5541_v28  ;;  %v5601_v27 = vld [vmem:[#allocation13 + $0x328] ss:$20 sps:$4 sm:$0xff]   ;;  %v5606_v28 = vld [vmem:[#allocation13 + $0x34c] ss:$20 sps:$4 sm:$0xff]  }
 0x902   :  { %4030 = vmatprep.subr.bf16.mxu0 %v5546_v29  ;;  %4112 = vmatprep.subr.bf16.mxu1 %v5549_v30  ;;  %v5609_v29 = vld [vmem:[#allocation13 + $0x354] ss:$20 sps:$4 sm:$0xff]  }
 0x903   :  { %v5604_v30 = vld [vmem:[#allocation13 + $0x348] ss:$20 sps:$4 sm:$0xff]  }
 0x905   :  { %4031 = vmatpush1.bf16.msra.mxu0 %v5544_v31  ;;  %4113 = vmatpush1.bf16.msra.mxu1 %v5547_v32  ;;  %v5607_v31 = vld [vmem:[#allocation13 + $0x350] ss:$20 sps:$4 sm:$0xff]   ;;  %v5612_v32 = vld [vmem:[#allocation13 + $0x374] ss:$20 sps:$4 sm:$0xff]  }
 0x906   :  { %4032 = vmatprep.subr.bf16.mxu0 %v5552_v33  ;;  %4114 = vmatprep.subr.bf16.mxu1 %v5555_v34  ;;  %v5615_v33 = vld [vmem:[#allocation13 + $0x37c] ss:$20 sps:$4 sm:$0xff]  }
 0x907   :  { %v5610_v34 = vld [vmem:[#allocation13 + $0x370] ss:$20 sps:$4 sm:$0xff]  }
 0x909   :  { %4033 = vmatpush1.bf16.msra.mxu0 %v5550_v35  ;;  %4115 = vmatpush1.bf16.msra.mxu1 %v5553_v36  ;;  %v5613_v35 = vld [vmem:[#allocation13 + $0x378] ss:$20 sps:$4 sm:$0xff]   ;;  %v5618_v36 = vld [vmem:[#allocation13 + $0x39c] ss:$20 sps:$4 sm:$0xff]  }
 0x90a   :  { %4034 = vmatprep.subr.bf16.mxu0 %v5558_v37  ;;  %4116 = vmatprep.subr.bf16.mxu1 %v5561_v38  ;;  %v5621_v37 = vld [vmem:[#allocation13 + $0x3a4] ss:$20 sps:$4 sm:$0xff]  }
 0x90b   :  { %v5616_v38 = vld [vmem:[#allocation13 + $0x398] ss:$20 sps:$4 sm:$0xff]  }
 0x90d   :  { %4035 = vmatpush1.bf16.msra.mxu0 %v5556_v39  ;;  %4117 = vmatpush1.bf16.msra.mxu1 %v5559_v40  ;;  %v5619_v39 = vld [vmem:[#allocation13 + $0x3a0] ss:$20 sps:$4 sm:$0xff]   ;;  %v5624_v40 = vld [vmem:[#allocation13 + $0x3c4] ss:$20 sps:$4 sm:$0xff]  }
 0x90e   :  { %4036 = vmatprep.subr.bf16.mxu0 %v5564_v41  ;;  %4118 = vmatprep.subr.bf16.mxu1 %v5567_v42  ;;  %v5627_v41 = vld [vmem:[#allocation13 + $0x3cc] ss:$20 sps:$4 sm:$0xff]  }
 0x90f   :  { %v5622_v42 = vld [vmem:[#allocation13 + $0x3c0] ss:$20 sps:$4 sm:$0xff]  }
 0x911   :  { %4037 = vmatpush1.bf16.msra.mxu0 %v5562_v43  ;;  %4119 = vmatpush1.bf16.msra.mxu1 %v5565_v44  ;;  %v5625_v43 = vld [vmem:[#allocation13 + $0x3c8] ss:$20 sps:$4 sm:$0xff]   ;;  %v5630_v44 = vld [vmem:[#allocation13 + $0x3ec] ss:$20 sps:$4 sm:$0xff]  }
 0x912   :  { %4038 = vmatprep.subr.bf16.mxu0 %v5570_v45  ;;  %4120 = vmatprep.subr.bf16.mxu1 %v5573_v46  ;;  %v5633_v45 = vld [vmem:[#allocation13 + $0x3f4] ss:$20 sps:$4 sm:$0xff]  }
 0x913   :  { %v5628_v46 = vld [vmem:[#allocation13 + $0x3e8] ss:$20 sps:$4 sm:$0xff]  }
 0x915   :  { %4039 = vmatpush1.bf16.msra.mxu0 %v5568_v47  ;;  %4121 = vmatpush1.bf16.msra.mxu1 %v5571_v48  ;;  %v5631_v47 = vld [vmem:[#allocation13 + $0x3f0] ss:$20 sps:$4 sm:$0xff]   ;;  %v5636_v48 = vld [vmem:[#allocation13 + $0x414] ss:$20 sps:$4 sm:$0xff]  }
 0x916   :  { %4049 = vmatprep.subr.bf16.mxu0 %v5576_v49  ;;  %4131 = vmatprep.subr.bf16.mxu1 %v5579_v50  ;;  %v5639_v49 = vld [vmem:[#allocation13 + $0x41c] ss:$20 sps:$4 sm:$0xff]  }
 0x917   :  { %v5634_v50 = vld [vmem:[#allocation13 + $0x410] ss:$20 sps:$4 sm:$0xff]  }
 0x9ab   :  { %v2912_v51 = vpop.f32.mrb[8].mxu0  ;;  %v6232_v52 = vpop.f32.mrb[28].mxu1 }
 0x9ac   :  { %v2964_v53 = vmul.f32 1.442695, %v2912_v51  ;;  %v2914_v54 = vpop.f32.mrb[9].mxu0  ;;  %v2955_v55 = vpop.f32.mrb[29].mxu1  ;;  %vm2960_vm7 = vcmp.gt.f32.partialorder %v2912_v51, 0.0  ;;  %vm2962_vm10 = vcmp.gt.f32.partialorder %v6232_v52, 0.0 }
 0x9ad   :  { %v2966_v56 = vmul.f32 1.442695, %v2914_v54  ;;  %v2916_v57 = vpop.f32.mrb[10].mxu0  ;;  %v2957_v58 = vpop.f32.mrb[30].mxu1  ;;  %v2970_v59 = vmul.f32 1.442695, %v2955_v55 }
 0x9ae   :  { %5712 = vpow2.f32 %v2964_v53  ;;  %v2917_v60 = vpop.f32.mrb[11].mxu0  ;;  %v2958_v61 = vpop.f32.mrb[31].mxu1  ;;  %vm2961_vm8 = vcmp.gt.f32.partialorder %v2914_v54, 0.0  ;;  %vm2963_vm9 = vcmp.gt.f32.partialorder %v2955_v55, 0.0  ;;  %v2968_v53 = vmul.f32 1.442695, %v6232_v52 }
 0x9af   :  { %5714 = vpow2.f32 %v2966_v56  ;;  %v5640_v56 = vld [vmem:[#allocation13 + $0x438] ss:$20 sps:$4 sm:$0xff]   ;;  %v5643_v57 = vld [vmem:[#allocation13 + $0x440] ss:$20 sps:$4 sm:$0xff]   ;;  %v5649_v61 = vld [vmem:[#allocation13 + $0x468] ss:$20 sps:$4 sm:$0xff]  }
 0x9b0   :  { %5716 = vpow2.f32 %v2970_v59  ;;  %v5648_v58 = vld [vmem:[#allocation13 + $0x464] ss:$20 sps:$4 sm:$0xff]   ;;  %v5651_v59 = vld [vmem:[#allocation13 + $0x46c] ss:$20 sps:$4 sm:$0xff]  }
 0x9b1   :  { %5718 = vpow2.f32 %v2968_v53  ;;  %v5646_v60 = vld [vmem:[#allocation13 + $0x460] ss:$20 sps:$4 sm:$0xff]  }
 0x9b8   :  { %v5713_v62 = vpop.eup %5712 }
 0x9b9   :  { %v4635_v63 = vadd.f32 -1.0, %v5713_v62  ;;  %v5715_v0 = vpop.eup %5714  ;;  %v5654_v62 = vld [vmem:[#allocation13 + $0x48c] ss:$20 sps:$4 sm:$0xff]  }
 0x9ba   :  { %v5717_v1 = vpop.eup %5716  ;;  %v4636_v2 = vadd.f32 -1.0, %v5715_v0  ;;  %v5652_v0 = vld [vmem:[#allocation13 + $0x488] ss:$20 sps:$4 sm:$0xff]  }
 0x9bb   :  { %v2976_v3 = vsel %vm2960_vm7, %v2912_v51, %v4635_v63  ;;  %v4638_v4 = vadd.f32 -1.0, %v5717_v1  ;;  %v5637_v51 = vld [vmem:[#allocation13 + $0x418] ss:$20 sps:$4 sm:$0xff]   ;;  %v5657_v63 = vld [vmem:[#allocation13 + $0x494] ss:$20 sps:$4 sm:$0xff]  }
 0x9bc   :  { %v2977_v5 = vsel %vm2961_vm8, %v2914_v54, %v4636_v2  ;;  %v6236_v10 = vpack.c.bf16 %v2976_v3, %v2976_v3  ;;  %v5642_v54 = vld [vmem:[#allocation13 + $0x43c] ss:$20 sps:$4 sm:$0xff]   ;;  %v5660_v2 = vld [vmem:[#allocation13 + $0x4b4] ss:$20 sps:$4 sm:$0xff]  }
 0x9bd   :  { %v6234_v6 = vpack.c.bf16 %v2977_v5, %v2977_v5  ;;  %v2979_v7 = vsel %vm2963_vm9, %v2955_v55, %v4638_v4  ;;  %v5645_v55 = vld [vmem:[#allocation13 + $0x444] ss:$20 sps:$4 sm:$0xff]   ;;  %v5663_v3 = vld [vmem:[#allocation13 + $0x4bc] ss:$20 sps:$4 sm:$0xff]   ;;  %v5719_v4 = vpop.eup %5718 }
 0x9be   :  { %v6240_v13 = vpack.c.bf16 %v2979_v7, %v2979_v7  ;;  %v5655_v1 = vld [vmem:[#allocation13 + $0x490] ss:$20 sps:$4 sm:$0xff]   ;;  %v5661_v7 = vld [vmem:[#allocation13 + $0x4b8] ss:$20 sps:$4 sm:$0xff]  }
 0x9bf   :  { %4040 = vmatprep.mubr.bf16.mxu0 %v6234_v6  ;;  %4122 = vmatprep.mubr.bf16.mxu1 %v6234_v6  ;;  %v5658_v5 = vld [vmem:[#allocation13 + $0x4b0] ss:$20 sps:$4 sm:$0xff]  }
 0x9c0   :  { %4041 = vmatmul.mubr.bf16.vlgmr.msra.gmra.mrb[12].mxu0 %v6236_v10  ;;  %4123 = vmatmul.mubr.bf16.vlgmr.msra.gmra.mrb[32].mxu1 %v6236_v10 }
 0x9c1   :  { %4050 = vmatpush1.bf16.msra.mxu0 %v5574_v8  ;;  %4132 = vmatpush1.bf16.msra.mxu1 %v5577_v9  ;;  %v5666_v8 = vld [vmem:[#allocation13 + $0x4dc] ss:$20 sps:$4 sm:$0xff]   ;;  %v5669_v9 = vld [vmem:[#allocation13 + $0x4e4] ss:$20 sps:$4 sm:$0xff]  }
 0x9c2   :  { %4081 = vmatprep.mubr.bf16.mxu0 %v6240_v13  ;;  %4163 = vmatprep.mubr.bf16.mxu1 %v6240_v13 }
 0x9c3   :  { %4051 = vmatprep.subr.bf16.mxu0 %v5582_v11  ;;  %4133 = vmatprep.subr.bf16.mxu1 %v5585_v12  ;;  %v4637_v11 = vadd.f32 -1.0, %v5719_v4  ;;  %v5664_v12 = vld [vmem:[#allocation13 + $0x4d8] ss:$20 sps:$4 sm:$0xff]  }
 0x9c5   :  { %4052 = vmatpush1.bf16.msra.mxu0 %v5580_v14  ;;  %4134 = vmatpush1.bf16.msra.mxu1 %v5583_v15  ;;  %v5667_v14 = vld [vmem:[#allocation13 + $0x4e0] ss:$20 sps:$4 sm:$0xff]   ;;  %v5670_v15 = vld [vmem:[#allocation13 + $0x150] ss:$20 sps:$4 sm:$0xff]  }
 0x9c6   :  { %4053 = vmatprep.subr.bf16.mxu0 %v5588_v16  ;;  %4135 = vmatprep.subr.bf16.mxu1 %v5591_v17  ;;  %v5671_v16 = vld [vmem:[#allocation13 + $0x3d0] ss:$20 sps:$4 sm:$0xff]   ;;  %v2978_v17 = vsel %vm2962_vm10, %v6232_v52, %v4637_v11  ;;  %v5677_v52 = vld [vmem:[#allocation13 + $0x2b8] ss:$20 sps:$4 sm:$0xff]  }
 0x9c9   :  { %4054 = vmatpush1.bf16.msra.mxu0 %v5586_v18  ;;  %4136 = vmatpush1.bf16.msra.mxu1 %v5589_v19  ;;  %v5672_v18 = vld [vmem:[#allocation13 + $0x10] ss:$20 sps:$4 sm:$0xff]   ;;  %v6249_v19 = vpack.c.bf16 %v2978_v17, %v2978_v17 }
 0x9ca   :  { %4055 = vmatprep.subr.bf16.mxu0 %v5594_v21  ;;  %4137 = vmatprep.subr.bf16.mxu1 %v5597_v22  ;;  %v5673_v21 = vld [vmem:[#allocation13 + $0x290] ss:$20 sps:$4 sm:$0xff]   ;;  %v5674_v22 = vld [vmem:[#allocation13 + $0x178] ss:$20 sps:$4 sm:$0xff]  }
 0x9cd   :  { %4056 = vmatpush1.bf16.msra.mxu0 %v5592_v23  ;;  %4138 = vmatpush1.bf16.msra.mxu1 %v5595_v20  ;;  %v5675_v23 = vld [vmem:[#allocation13 + $0x3f8] ss:$20 sps:$4 sm:$0xff]  }
 0x9ce   :  { %4057 = vmatprep.subr.bf16.mxu0 %v5600_v24  ;;  %4139 = vmatprep.subr.bf16.mxu1 %v5603_v25  ;;  %v5676_v20 = vld [vmem:[#allocation13 + $0x38] ss:$20 sps:$4 sm:$0xff]   ;;  %v5678_v24 = vld [vmem:[#allocation13 + $0x1a0] ss:$20 sps:$4 sm:$0xff]  }
 0x9cf   :  { %v5679_v25 = vld [vmem:[#allocation13 + $0x420] ss:$20 sps:$4 sm:$0xff]  }
 0x9d1   :  { %4058 = vmatpush1.bf16.msra.mxu0 %v5598_v26  ;;  %4140 = vmatpush1.bf16.msra.mxu1 %v5601_v27  ;;  %v5680_v26 = vld [vmem:[#allocation13 + $0x60] ss:$20 sps:$4 sm:$0xff]  }
 0x9d2   :  { %4059 = vmatprep.subr.bf16.mxu0 %v5606_v28  ;;  %4141 = vmatprep.subr.bf16.mxu1 %v5609_v29  ;;  %v5681_v27 = vld [vmem:[#allocation13 + $0x2e0] ss:$20 sps:$4 sm:$0xff]   ;;  %v5682_v28 = vld [vmem:[#allocation13 + $0x1c8] ss:$20 sps:$4 sm:$0xff]  }
 0x9d3   :  { %v5683_v29 = vld [vmem:[#allocation13 + $0x448] ss:$20 sps:$4 sm:$0xff]  }
 0x9d5   :  { %4060 = vmatpush1.bf16.msra.mxu0 %v5604_v30  ;;  %4142 = vmatpush1.bf16.msra.mxu1 %v5607_v31  ;;  %v5684_v30 = vld [vmem:[#allocation13 + $0x88] ss:$20 sps:$4 sm:$0xff]   ;;  %v5686_v31 = vld [vmem:[#allocation13 + $0x1f0] ss:$20 sps:$4 sm:$0xff]  }
 0x9d6   :  { %4061 = vmatprep.subr.bf16.mxu0 %v5612_v32  ;;  %4143 = vmatprep.subr.bf16.mxu1 %v5615_v33  ;;  %v5688_v32 = vld [vmem:[#allocation13 + $0xb0] ss:$20 sps:$4 sm:$0xff]  }
 0x9d7   :  { %v5689_v33 = vld [vmem:[#allocation13 + $0x330] ss:$20 sps:$4 sm:$0xff]  }
 0x9d9   :  { %4062 = vmatpush1.bf16.msra.mxu0 %v5610_v34  ;;  %4144 = vmatpush1.bf16.msra.mxu1 %v5613_v35  ;;  %v5690_v34 = vld [vmem:[#allocation13 + $0x218] ss:$20 sps:$4 sm:$0xff]  }
 0x9da   :  { %4063 = vmatprep.subr.bf16.mxu0 %v5618_v36  ;;  %4145 = vmatprep.subr.bf16.mxu1 %v5621_v37  ;;  %v5691_v35 = vld [vmem:[#allocation13 + $0x498] ss:$20 sps:$4 sm:$0xff]  }
 0x9db   :  { %v5692_v36 = vld [vmem:[#allocation13 + $0xd8] ss:$20 sps:$4 sm:$0xff]  }
 0x9dc   :  { %v5693_v37 = vld [vmem:[#allocation13 + $0x358] ss:$20 sps:$4 sm:$0xff]  }
 0x9dd   :  { %4064 = vmatpush1.bf16.msra.mxu0 %v5616_v38  ;;  %4146 = vmatpush1.bf16.msra.mxu1 %v5619_v39  ;;  %v5694_v38 = vld [vmem:[#allocation13 + $0x240] ss:$20 sps:$4 sm:$0xff]  }
 0x9de   :  { %4065 = vmatprep.subr.bf16.mxu0 %v5624_v40  ;;  %4147 = vmatprep.subr.bf16.mxu1 %v5627_v41  ;;  %v5695_v39 = vld [vmem:[#allocation13 + $0x4c0] ss:$20 sps:$4 sm:$0xff]  }
 0x9df   :  { %v5696_v40 = vld [vmem:[#allocation13 + $0x100] ss:$20 sps:$4 sm:$0xff]  }
 0x9e0   :  { %v5697_v41 = vld [vmem:[#allocation13 + $0x380] ss:$20 sps:$4 sm:$0xff]  }
 0x9e1   :  { %4066 = vmatpush1.bf16.msra.mxu0 %v5622_v42  ;;  %4148 = vmatpush1.bf16.msra.mxu1 %v5625_v43  ;;  %v5698_v42 = vld [vmem:[#allocation13 + $0x268] ss:$20 sps:$4 sm:$0xff]  }
 0x9e2   :  { %4067 = vmatprep.subr.bf16.mxu0 %v5630_v44  ;;  %4149 = vmatprep.subr.bf16.mxu1 %v5633_v45  ;;  %v5699_v43 = vld [vmem:[#allocation13 + $0x4e8] ss:$20 sps:$4 sm:$0xff]  }
 0x9e3   :  { %v5700_v44 = vld [vmem:[#allocation13 + $0x128] ss:$20 sps:$4 sm:$0xff]  }
 0x9e4   :  { %v5701_v45 = vld [vmem:[#allocation13 + $0x3a8] ss:$20 sps:$4 sm:$0xff]  }
 0x9e5   :  { %4068 = vmatpush1.bf16.msra.mxu0 %v5628_v46  ;;  %4150 = vmatpush1.bf16.msra.mxu1 %v5631_v47 }
 0x9e6   :  { %4069 = vmatprep.subr.bf16.mxu0 %v5636_v48  ;;  %4151 = vmatprep.subr.bf16.mxu1 %v5639_v49 }
 0x9e9   :  { %4070 = vmatpush1.bf16.msra.mxu0 %v5634_v50  ;;  %4152 = vmatpush1.bf16.msra.mxu1 %v5637_v51 }
 0x9ea   :  { %4071 = vmatprep.subr.bf16.mxu0 %v5642_v54  ;;  %4153 = vmatprep.subr.bf16.mxu1 %v5645_v55 }
 0x9ed   :  { %4072 = vmatpush1.bf16.msra.mxu0 %v5640_v56  ;;  %4154 = vmatpush1.bf16.msra.mxu1 %v5643_v57 }
 0x9ee   :  { %4073 = vmatprep.subr.bf16.mxu0 %v5648_v58  ;;  %4155 = vmatprep.subr.bf16.mxu1 %v5651_v59 }
 0x9f1   :  { %4074 = vmatpush1.bf16.msra.mxu0 %v5646_v60  ;;  %4156 = vmatpush1.bf16.msra.mxu1 %v5649_v61 }
 0x9f2   :  { %4075 = vmatprep.subr.bf16.mxu0 %v5654_v62  ;;  %4157 = vmatprep.subr.bf16.mxu1 %v5657_v63 }
 0x9f5   :  { %4076 = vmatpush1.bf16.msra.mxu0 %v5652_v0  ;;  %4158 = vmatpush1.bf16.msra.mxu1 %v5655_v1 }
 0x9f6   :  { %4077 = vmatprep.subr.bf16.mxu0 %v5660_v2  ;;  %4159 = vmatprep.subr.bf16.mxu1 %v5663_v3 }
 0x9f9   :  { %4078 = vmatpush1.bf16.msra.mxu0 %v5658_v5  ;;  %4160 = vmatpush1.bf16.msra.mxu1 %v5661_v7 }
 0x9fa   :  { %4079 = vmatprep.subr.bf16.mxu0 %v5666_v8  ;;  %4161 = vmatprep.subr.bf16.mxu1 %v5669_v9 }
 0x9fd   :  { %4080 = vmatpush1.bf16.msra.mxu0 %v5664_v12  ;;  %4162 = vmatpush1.bf16.msra.mxu1 %v5667_v14 }
 0x9fe   :  { %4843 = vmatprep.subr.bf16.mxu0 %v5670_v15  ;;  %4865 = vmatprep.subr.bf16.mxu1 %v5671_v16 }
 0xa00   :  { %4082 = vmatmul.mubr.bf16.vlgmr.msra.gmra.mrb[12].mxu0 %v6249_v19  ;;  %4164 = vmatmul.mubr.bf16.vlgmr.msra.gmra.mrb[32].mxu1 %v6249_v19 }
 0xa01   :  { %4844 = vmatpush3.bf16.msra.mxu0 %v5672_v18  ;;  %4204 = vmatprep.mubr.bf16.mxu0 %v6234_v6  ;;  %v5685_v6 = vld [vmem:[#allocation13 + $0x308] ss:$20 sps:$4 sm:$0xff]  }
 0xa02   :  { %4866 = vmatpush3.bf16.msra.mxu1 %v5673_v21  ;;  %4244 = vmatprep.mubr.bf16.mxu1 %v6240_v13  ;;  %v5687_v13 = vld [vmem:[#allocation13 + $0x470] ss:$20 sps:$4 sm:$0xff]  }
 0xa03   :  { %4845 = vmatprep.subr.bf16.mxu0 %v5674_v22  ;;  %4867 = vmatprep.subr.bf16.mxu1 %v5675_v23 }
 0xa05   :  { %4846 = vmatpush3.bf16.msra.mxu0 %v5676_v20 }
 0xa06   :  { %4868 = vmatpush3.bf16.msra.mxu1 %v5677_v52  ;;  %4847 = vmatprep.subr.bf16.mxu0 %v5678_v24 }
 0xa07   :  { %4869 = vmatprep.subr.bf16.mxu1 %v5679_v25 }
 0xa09   :  { %4848 = vmatpush3.bf16.msra.mxu0 %v5680_v26 }
 0xa0a   :  { %4870 = vmatpush3.bf16.msra.mxu1 %v5681_v27  ;;  %4849 = vmatprep.subr.bf16.mxu0 %v5682_v28 }
 0xa0b   :  { %4871 = vmatprep.subr.bf16.mxu1 %v5683_v29 }
 0xa0d   :  { %4850 = vmatpush3.bf16.msra.mxu0 %v5684_v30 }
 0xa0e   :  { %4872 = vmatpush3.bf16.msra.mxu1 %v5685_v6  ;;  %4851 = vmatprep.subr.bf16.mxu0 %v5686_v31 }
 0xa0f   :  { %4873 = vmatprep.subr.bf16.mxu1 %v5687_v13 }
 0xa11   :  { %4852 = vmatpush3.bf16.msra.mxu0 %v5688_v32 }
 0xa12   :  { %4874 = vmatpush3.bf16.msra.mxu1 %v5689_v33  ;;  %4853 = vmatprep.subr.bf16.mxu0 %v5690_v34 }
 0xa13   :  { %4875 = vmatprep.subr.bf16.mxu1 %v5691_v35 }
 0xa15   :  { %4854 = vmatpush3.bf16.msra.mxu0 %v5692_v36 }
 0xa16   :  { %4876 = vmatpush3.bf16.msra.mxu1 %v5693_v37  ;;  %4855 = vmatprep.subr.bf16.mxu0 %v5694_v38 }
 0xa17   :  { %4877 = vmatprep.subr.bf16.mxu1 %v5695_v39 }
 0xa19   :  { %4856 = vmatpush3.bf16.msra.mxu0 %v5696_v40 }
 0xa1a   :  { %4878 = vmatpush3.bf16.msra.mxu1 %v5697_v41  ;;  %4857 = vmatprep.subr.bf16.mxu0 %v5698_v42 }
 0xa1b   :  { %4879 = vmatprep.subr.bf16.mxu1 %v5699_v43 }
 0xa1d   :  { %4858 = vmatpush3.bf16.msra.mxu0 %v5700_v44 }
 0xa1e   :  { %4880 = vmatpush3.bf16.msra.mxu1 %v5701_v45 }
 0xa20   :  { %4205 = vmatmul.mubr.bf16.vlgmr.msra.gmra.mrb[16].mxu0 %v6236_v10 }
 0xa21   :  { %4245 = vmatmul.mubr.bf16.vlgmr.msra.gmra.mrb[36].mxu1 %v6249_v19 }
 0xa22   :  { %5885 = shalt.err (!%p5882_p4)
}
 0xa23   :  { %s5886_s8 = scalar_lea.hbm %s6294_s13, 128 }
 0xa24   :  { %p5887_p5 = scmp.ne.s32.totalorder %s6294_s13, %s5886_s8  ;;  %p5890_p6 = scmp.lt.u32.totalorder %s5886_s8, %s6294_s13 }
 0xa26   :  { %p5892_p7 = pnand %p5890_p6, %p5887_p5 }
 0xa28   :  { %5895 = shalt.err (!%p5892_p7)
}
 0xa29   :  { %4277 = dma.vmem_to_hbm [thread:$0]  %s4275_s1, 128, %s6294_s13, [#allocation16]  }
 0xa2a   :  { %s5950_s4 = smov [#allocation14]  }
 0xa2b   :  { %s4264_s13 = sshll.u32 %s5950_s4, 4  ;;  %s4265_s13 = int_to_ptr.vmem [resolvable:$true] %s4264_s13 }
 0xa2c   :  { %s5896_s6 = scalar_lea.vmem %s4265_s13, 640  ;;  %p5901_p9 = scmp.lt.s32.totalorder %s4265_s13, %s4265_s13 }
 0xa2d   :  { %p5897_p8 = scmp.ne.s32.totalorder %s4265_s13, %s5896_s6  ;;  %p5902_p10 = scmp.lt.s32.totalorder %s5896_s6, %s5896_s6 }
 0xa2f   :  { %p5903_p11 = por %p5902_p10, %p5901_p9 }
 0xa31   :  { %p5904_p12 = pnand %p5903_p11, %p5897_p8 }
 0xad3   :  { %v4083_v10 = vpop.f32.mrb[12].mxu0  ;;  %v4165_v46 = vpop.f32.mrb[32].mxu1 }
 0xad4   :  { %4252 = vst [vmem:[#allocation14] sm:$0xff] %v4083_v10  ;;  %4254 = vst [vmem:[#allocation14 + $0x10] sm:$0xff] %v4165_v46  ;;  %v4085_v47 = vpop.f32.mrb[13].mxu0  ;;  %v4167_v48 = vpop.f32.mrb[33].mxu1 }
 0xad5   :  { %4253 = vst [vmem:[#allocation14 + $0x8] sm:$0xff] %v4085_v47  ;;  %4255 = vst [vmem:[#allocation14 + $0x18] sm:$0xff] %v4167_v48  ;;  %v4087_v49 = vpop.f32.mrb[14].mxu0  ;;  %v4169_v50 = vpop.f32.mrb[34].mxu1 }
 0xad6   :  { %v4088_v51 = vpop.f32.mrb[15].mxu0  ;;  %v4170_v53 = vpop.f32.mrb[35].mxu1 }
 0xaf3   :  { %v4859_v54 = vpop.f32.mrb[16].mxu0 }
 0xaf4   :  { %v4881_v55 = vpop.f32.mrb[36].mxu1  ;;  %v4860_v56 = vpop.f32.mrb[17].mxu0 }
 0xaf5   :  { %v4861_v57 = vadd.f32 %v4860_v56, %v4859_v54  ;;  %v4882_v58 = vpop.f32.mrb[37].mxu1  ;;  %v4862_v59 = vpop.f32.mrb[18].mxu0 }
 0xaf6   :  { %v4883_v60 = vadd.f32 %v4882_v58, %v4881_v55  ;;  %v4884_v61 = vpop.f32.mrb[38].mxu1  ;;  %v4863_v62 = vpop.f32.mrb[19].mxu0 }
 0xaf7   :  { %v4885_v63 = vpop.f32.mrb[39].mxu1 }
 0xaf8   :  { %v4247_v0 = vadd.f32 %v4883_v60, %v4861_v57 }
 0xafa   :  { %4256 = vst [vmem:[#allocation14 + $0x20] sm:$0xff] %v4247_v0 }
 0xafb   :  { %5907 = shalt.err (!%p5904_p12)
}
 0xafc   :  { %s5908_s27 = scalar_lea.hbm %s6293_s12, 640 }
 0xafd   :  { %p5909_p13 = scmp.ne.s32.totalorder %s6293_s12, %s5908_s27  ;;  %p5912_p0 = scmp.lt.u32.totalorder %s5908_s27, %s6293_s12 }
 0xaff   :  { %p5914_p1 = pnand %p5912_p0, %p5909_p13 }
 0xb01   :  { %5917 = shalt.err (!%p5914_p1)
}
 0xb02   :  { %4267 = dma.vmem_to_hbm [thread:$0]  %s4265_s13, 640, %s6293_s12, [#allocation4]  }
 0xb03   :  { %5926 = dma.done.wait [#allocation4], 640  }
 0xb04   :  { %5927 = vsyncadd [#allocation4], 4294966656 }
 0xb05   :  { %5928 = dma.done.wait [#allocation16], 128  }
 0xb06   :  { %5929 = vsyncadd [#allocation16], 4294967168 }
 0xb07   :  { %4284 = vsyncpa [#allocation3], 1 }
 0xb08   :  { %4285 = vsyncpa [#allocation6], 1 }
 0xb09   :  { %4286 = vsyncpa [#allocation9], 1 }
 0xb0a   :  { %4287 = vsyncpa [#allocation12], 1 }
 0xb0b   :  { %4288 = vsyncpa [#allocation4], 1 }
 0xb0c   :  { %4289 = vsyncpa [#allocation16], 1 }

</bundles_post_ra>
